<compile_context>
chip_gen: v7x
topology: tpu7x:2x2x1
jax: 0.10.0
libtpu: 0.0.40
codegen_flags: <defaults>
</compile_context>

<pallas_src>
import functools
import math

import jax
import jax.numpy as jnp
from jax.experimental import pallas as pl
from jax.experimental.pallas import tpu as pltpu

BN_EPS = 1e-5


def _round_up(v, m):
    return ((v + m - 1) // m) * m


def apu_kernel(x_ref, wc_ref, bc_ref, gamma_ref, beta_ref, wcls_ref, bcls_ref,
               logits_ref, idx_ref, *, h, w, ovp):
    """
    x_ref     : (B, Cin, H*W) VMEM  -- spatial dims flattened onto lanes
    wc_ref    : (Ci, Cin)     SMEM  -- 1x1 conv weight (scalar reads)
    bc_ref    : (Ci,)         SMEM  -- conv bias
    gamma_ref : (Ci,)         SMEM  -- BN scale
    beta_ref  : (Ci,)         SMEM  -- BN shift
    wcls_ref  : (Ci*H*W, OC)  VMEM  -- fused (pooling-folded) classifier weight
    bcls_ref  : (1, OC)       VMEM  -- fused classifier bias (lane-padded)
    logits_ref: (B, OC)       VMEM out -- [ver logits | hor logits] (padded)
    idx_ref   : (B, 128)      VMEM out -- lanes 0..3 = index1..index4
    """
    B, Cin, HW = x_ref.shape
    Ci = wc_ref.shape[0]
    OC = logits_ref.shape[1]
    inv_n = 1.0 / float(B * HW)

    # ---- 1x1 conv: k-outer / c-inner so each input channel is loaded once --
    conv = [None] * Ci
    for k in range(Cin):
        x_k = x_ref[:, k, :].astype(jnp.float32)            # (B, HW) lane-dense
        for c in range(Ci):
            term = x_k * wc_ref[c, k]
            conv[c] = term if conv[c] is None else conv[c] + term

    # ---- BatchNorm2d (training-mode biased batch stats, two-pass variance),
    #      ReLU; build per-channel lane-dense features -----------------------
    feats = []
    for c in range(Ci):
        xc = conv[c] + bc_ref[c]                             # (B, HW)
        mu = jnp.sum(xc) * inv_n
        d = xc - mu
        var = jnp.sum(d * d) * inv_n                         # shifted variance
        scale = jax.lax.rsqrt(var + BN_EPS) * gamma_ref[c]
        feats.append(jnp.maximum(d * scale + beta_ref[c], 0.0))

    # ---- single fused classifier matmul: row/col pooling is folded into the
    #      weights host-side; ver+hor logits come out in one lane-dense row ---
    lhs = jnp.concatenate(feats, axis=1)                     # (B, Ci*HW)
    logits = jnp.dot(lhs, wcls_ref[...],
                     preferred_element_type=jnp.float32) + bcls_ref[...]
    logits_ref[...] = logits                                 # one 256-lane store

    # ---- fused argmax / index chain: 4 segments, 2 batched XLU reductions ---
    lane = jax.lax.broadcasted_iota(jnp.int32, (B, OC), 1)   # shared iota
    NEG = jnp.float32(-jnp.inf)
    BIG = jnp.int32(2 ** 30)
    segs = ((0, h - 3), (h - 3, 2 * h - 5), (2 * h - 5, 3 * h - 6),
            (ovp, ovp + w - 1))
    vals_l, idxs_l = [], []
    for s0, s1 in segs:
        valid = (lane >= s0) & (lane < s1)
        vals_l.append(jnp.where(valid, logits, NEG))
        idxs_l.append(jnp.where(valid, lane - s0, BIG))
    vals4 = jnp.stack(vals_l, axis=0)                        # (4, B, OC)
    idx4 = jnp.stack(idxs_l, axis=0)                         # (4, B, OC)
    m = jnp.max(vals4, axis=2, keepdims=True)                # (4, B, 1)
    first = jnp.min(jnp.where(vals4 == m, idx4, BIG),        # first occurrence
                    axis=2, keepdims=True)                   # (4, B, 1)

    i1 = first[0]                                            # (B, 1)
    i2 = jnp.maximum(first[1], i1 + 1)
    i3 = jnp.maximum(first[2], i2 + 1)
    i4 = first[3]

    lane_i = lane[:, :idx_ref.shape[1]]
    idx_ref[...] = jnp.where(lane_i == 0, i1,
                   jnp.where(lane_i == 1, i2,
                   jnp.where(lane_i == 2, i3,
                   jnp.where(lane_i == 3, i4, 0))))


def apu_forward(x_nchw, params, h, w):
    """Flatten spatial dims (free reshape), run the fused kernel, slice pads."""
    B, Cin, H, W = x_nchw.shape
    assert (H, W) == (h, w)
    assert h >= 4 and w >= 2, "APU index segments must be non-empty"
    Ci = params["wc"].shape[0]
    OV = 3 * h - 6
    OH = w - 1
    OVP = _round_up(OV, 128)
    OHP = _round_up(OH, 128)
    OC = OVP + OHP
    K = Ci * H * W
    assert params["wcls"].shape == (K, OC)

    x_flat = x_nchw.reshape(B, Cin, H * W)   # contiguous reshape, no dtype cast

    vmem = pl.BlockSpec(memory_space=pltpu.MemorySpace.VMEM)
    smem = pl.BlockSpec(memory_space=pltpu.MemorySpace.SMEM)

    flops = (2 * B * H * W * Cin * Ci          # conv FMAs
             + 8 * B * H * W * Ci              # BN / ReLU
             + 2 * B * K * OC)                 # fused classifier matmul
    bytes_accessed = 4 * (x_flat.size + params["wcls"].size + params["bcls"].size
                          + params["wc"].size + 3 * Ci + B * (OC + 128))

    kernel = functools.partial(apu_kernel, h=h, w=w, ovp=OVP)
    logits_pad, idx_pad = pl.pallas_call(
        kernel,
        out_shape=(jax.ShapeDtypeStruct((B, OC), jnp.float32),
                   jax.ShapeDtypeStruct((B, 128), jnp.int32)),
        in_specs=[vmem, smem, smem, smem, smem, vmem, vmem],
        out_specs=(vmem, vmem),
        cost_estimate=pl.CostEstimate(flops=flops, transcendentals=Ci,
                                      bytes_accessed=bytes_accessed),
    )(x_flat, params["wc"], params["bc"], params["gamma"], params["beta"],
      params["wcls"], params["bcls"])

    logit1 = logits_pad[:, :h - 3]
    logit2 = logits_pad[:, h - 3:2 * h - 5]
    logit3 = logits_pad[:, 2 * h - 5:OV]
    logit4 = logits_pad[:, OVP:OVP + OH]
    index1 = idx_pad[:, 0]
    index2 = idx_pad[:, 1]
    index3 = idx_pad[:, 2]
    index4 = idx_pad[:, 3]
    return [logit1, logit2, logit3, logit4], [index1, index2, index3, index4]


def init_params(key, in_channels, s, h, w):
    """Deterministic synthetic parameters (shapes per APUModule.__init__)."""
    ci = in_channels // s
    ov = (h - 3) + (h - 2) + (h - 1)
    oh = w - 1
    ovp = _round_up(ov, 128)
    ohp = _round_up(oh, 128)
    ks = jax.random.split(key, 8)

    def uni(k, shape, fan_in):
        bound = 1.0 / math.sqrt(fan_in)
        return jax.random.uniform(k, shape, jnp.float32, -bound, bound)

    wc = uni(ks[0], (ci, in_channels), in_channels)          # 1x1 conv weight
    bc = uni(ks[1], (ci,), in_channels)                      # conv bias
    gamma = 1.0 + 0.1 * jax.random.normal(ks[2], (ci,), jnp.float32)
    beta = 0.1 * jax.random.normal(ks[3], (ci,), jnp.float32)
    wver = uni(ks[4], (ov, h * ci), h * ci)                  # cls_ver weight
    bver = uni(ks[5], (ov,), h * ci)
    whor = uni(ks[6], (oh, w * ci), w * ci)                  # cls_hor weight
    bhor = uni(ks[7], (oh,), w * ci)

    # Fused classifier weights: fold the row/col mean-pooling into the
    # classifier matrices so the kernel does feat_flat @ W_fused directly.
    #   lv[b,o] = sum_{c,i,j} feat[b,c,i*W+j] * wver[o, i*ci+c] / W
    wv = jnp.transpose(wver.reshape(ov, h, ci), (2, 1, 0))             # (ci,h,ov)
    wv = jnp.broadcast_to(wv[:, :, None, :], (ci, h, w, ov)) / w
    wv = jnp.pad(wv.reshape(ci, h * w, ov), ((0, 0), (0, 0), (0, ovp - ov)))
    #   lh[b,o] = sum_{c,i,j} feat[b,c,i*W+j] * whor[o, j*ci+c] / H
    wh = jnp.transpose(whor.reshape(oh, w, ci), (2, 1, 0))             # (ci,w,oh)
    wh = jnp.broadcast_to(wh[:, None, :, :], (ci, h, w, oh)) / h
    wh = jnp.pad(wh.reshape(ci, h * w, oh), ((0, 0), (0, 0), (0, ohp - oh)))

    wcls = jnp.concatenate([wv, wh], axis=2).reshape(ci * h * w, ovp + ohp)
    bcls = jnp.concatenate([jnp.pad(bver, (0, ovp - ov)),
                            jnp.pad(bhor, (0, ohp - oh))]).reshape(1, ovp + ohp)

    return {
        "wc": wc, "bc": bc, "gamma": gamma, "beta": beta,
        "wcls": wcls, "bcls": bcls,
        # originals kept for the pure-JAX reference check
        "_wc": wc, "_bc": bc, "_gamma": gamma, "_beta": beta,
        "_wver": wver, "_bver": bver, "_whor": whor, "_bhor": bhor,
    }


def reference_logits(x_nchw, p):
    """Pure-JAX reference replicating the PyTorch NCHW math exactly."""
    B = x_nchw.shape[0]
    conv = jnp.einsum("ok,bkhw->bohw", p["_wc"], x_nchw) + p["_bc"][None, :, None, None]
    mu = conv.mean(axis=(0, 2, 3), keepdims=True)
    var = ((conv - mu) ** 2).mean(axis=(0, 2, 3), keepdims=True)
    bn = (conv - mu) / jnp.sqrt(var + BN_EPS)
    bn = bn * p["_gamma"][None, :, None, None] + p["_beta"][None, :, None, None]
    feat = jnp.maximum(bn, 0.0)                               # (B, Ci, H, W)

    rm = feat.mean(axis=3)                                    # (B, Ci, H)
    ver_vec = jnp.transpose(rm, (0, 2, 1)).reshape(B, -1)     # (B, H*Ci)
    lv = ver_vec @ p["_wver"].T + p["_bver"]

    cm = feat.mean(axis=2)                                    # (B, Ci, W)
    hor_vec = jnp.transpose(cm, (0, 2, 1)).reshape(B, -1)     # (B, W*Ci)
    lh = hor_vec @ p["_whor"].T + p["_bhor"]
    return lv, lh


if __name__ == "__main__":
    B, in_channels, s, h, w = 2, 4, 2, 16, 16

    key = jax.random.PRNGKey(0)
    k_x, k_p = jax.random.split(key)
    x = jax.random.normal(k_x, (B, in_channels, h, w), jnp.float32)  # NCHW like PyTorch
    params = init_params(k_p, in_channels, s, h, w)

    logits, indices = apu_forward(x, params, h, w)
    jax.block_until_ready(logits)
    jax.block_until_ready(indices)

    # sanity check against a pure-JAX reference of the PyTorch forward
    lv_ref, lh_ref = reference_logits(x, params)
    lv_got = jnp.concatenate(logits[:3], axis=1)
    lh_got = logits[3]
    assert jnp.allclose(lv_got, lv_ref, atol=1e-3, rtol=1e-3), "cls_ver logits mismatch"
    assert jnp.allclose(lh_got, lh_ref, atol=1e-3, rtol=1e-3), "cls_hor logits mismatch"

    # index chain reference
    r1 = lv_ref[:, :h - 3]
    r2 = lv_ref[:, h - 3:2 * h - 5]
    r3 = lv_ref[:, 2 * h - 5:]
    ri1 = jnp.argmax(r1, axis=1)
    ri2 = jnp.maximum(jnp.argmax(r2, axis=1), ri1 + 1)
    ri3 = jnp.maximum(jnp.argmax(r3, axis=1), ri2 + 1)
    ri4 = jnp.argmax(lh_ref, axis=1)
    for got, ref in zip(indices, [ri1, ri2, ri3, ri4]):
        assert jnp.all(got.astype(jnp.int32) == ref.astype(jnp.int32)), "index mismatch"

    print("KERNEL_OK")
</pallas_src>

<mosaic_0001>
module attributes {stable_mosaic.version = 11 : i64} {
  func.func @apu_kernel(%arg0: memref<2x4x256xf32, #tpu.memory_space<vmem>>, %arg1: memref<2x4xf32, #tpu.memory_space<smem>>, %arg2: memref<2xf32, #tpu.memory_space<smem>>, %arg3: memref<2xf32, #tpu.memory_space<smem>>, %arg4: memref<2xf32, #tpu.memory_space<smem>>, %arg5: memref<512x256xf32, #tpu.memory_space<vmem>>, %arg6: memref<1x256xf32, #tpu.memory_space<vmem>>, %arg7: memref<2x256xf32, #tpu.memory_space<vmem>>, %arg8: memref<2x128xi32, #tpu.memory_space<vmem>>) attributes {dimension_semantics = [], scalar_prefetch = 0 : i64, scratch_operands = 0 : i64, tpu.core_type = #tpu.core_type<tc>} {
    %c0 = arith.constant 0 : index
    %c0_0 = arith.constant 0 : index
    %c0_1 = arith.constant 0 : index
    %0 = vector.load %arg0[%c0, %c0_0, %c0_1] : memref<2x4x256xf32, #tpu.memory_space<vmem>>, vector<2x1x256xf32>
    %1 = vector.shape_cast %0 : vector<2x1x256xf32> to vector<2x256xf32>
    %c0_2 = arith.constant 0 : index
    %c0_3 = arith.constant 0 : index
    %2 = memref.load %arg1[%c0_2, %c0_3] : memref<2x4xf32, #tpu.memory_space<smem>>
    %3 = vector.broadcast %2 : f32 to vector<2x256xf32>
    %4 = arith.mulf %1, %3 : vector<2x256xf32>
    %c1 = arith.constant 1 : index
    %c0_4 = arith.constant 0 : index
    %5 = memref.load %arg1[%c1, %c0_4] : memref<2x4xf32, #tpu.memory_space<smem>>
    %6 = vector.broadcast %5 : f32 to vector<2x256xf32>
    %7 = arith.mulf %1, %6 : vector<2x256xf32>
    %c0_5 = arith.constant 0 : index
    %c1_6 = arith.constant 1 : index
    %c0_7 = arith.constant 0 : index
    %8 = vector.load %arg0[%c0_5, %c1_6, %c0_7] : memref<2x4x256xf32, #tpu.memory_space<vmem>>, vector<2x1x256xf32>
    %9 = vector.shape_cast %8 : vector<2x1x256xf32> to vector<2x256xf32>
    %c0_8 = arith.constant 0 : index
    %c1_9 = arith.constant 1 : index
    %10 = memref.load %arg1[%c0_8, %c1_9] : memref<2x4xf32, #tpu.memory_space<smem>>
    %11 = vector.broadcast %10 : f32 to vector<2x256xf32>
    %12 = arith.mulf %9, %11 : vector<2x256xf32>
    %13 = arith.addf %4, %12 : vector<2x256xf32>
    %c1_10 = arith.constant 1 : index
    %c1_11 = arith.constant 1 : index
    %14 = memref.load %arg1[%c1_10, %c1_11] : memref<2x4xf32, #tpu.memory_space<smem>>
    %15 = vector.broadcast %14 : f32 to vector<2x256xf32>
    %16 = arith.mulf %9, %15 : vector<2x256xf32>
    %17 = arith.addf %7, %16 : vector<2x256xf32>
    %c0_12 = arith.constant 0 : index
    %c2 = arith.constant 2 : index
    %c0_13 = arith.constant 0 : index
    %18 = vector.load %arg0[%c0_12, %c2, %c0_13] : memref<2x4x256xf32, #tpu.memory_space<vmem>>, vector<2x1x256xf32>
    %19 = vector.shape_cast %18 : vector<2x1x256xf32> to vector<2x256xf32>
    %c0_14 = arith.constant 0 : index
    %c2_15 = arith.constant 2 : index
    %20 = memref.load %arg1[%c0_14, %c2_15] : memref<2x4xf32, #tpu.memory_space<smem>>
    %21 = vector.broadcast %20 : f32 to vector<2x256xf32>
    %22 = arith.mulf %19, %21 : vector<2x256xf32>
    %23 = arith.addf %13, %22 : vector<2x256xf32>
    %c1_16 = arith.constant 1 : index
    %c2_17 = arith.constant 2 : index
    %24 = memref.load %arg1[%c1_16, %c2_17] : memref<2x4xf32, #tpu.memory_space<smem>>
    %25 = vector.broadcast %24 : f32 to vector<2x256xf32>
    %26 = arith.mulf %19, %25 : vector<2x256xf32>
    %27 = arith.addf %17, %26 : vector<2x256xf32>
    %c0_18 = arith.constant 0 : index
    %c3 = arith.constant 3 : index
    %c0_19 = arith.constant 0 : index
    %28 = vector.load %arg0[%c0_18, %c3, %c0_19] : memref<2x4x256xf32, #tpu.memory_space<vmem>>, vector<2x1x256xf32>
    %29 = vector.shape_cast %28 : vector<2x1x256xf32> to vector<2x256xf32>
    %c0_20 = arith.constant 0 : index
    %c3_21 = arith.constant 3 : index
    %30 = memref.load %arg1[%c0_20, %c3_21] : memref<2x4xf32, #tpu.memory_space<smem>>
    %31 = vector.broadcast %30 : f32 to vector<2x256xf32>
    %32 = arith.mulf %29, %31 : vector<2x256xf32>
    %33 = arith.addf %23, %32 : vector<2x256xf32>
    %c1_22 = arith.constant 1 : index
    %c3_23 = arith.constant 3 : index
    %34 = memref.load %arg1[%c1_22, %c3_23] : memref<2x4xf32, #tpu.memory_space<smem>>
    %35 = vector.broadcast %34 : f32 to vector<2x256xf32>
    %36 = arith.mulf %29, %35 : vector<2x256xf32>
    %37 = arith.addf %27, %36 : vector<2x256xf32>
    %c0_24 = arith.constant 0 : index
    %38 = memref.load %arg2[%c0_24] : memref<2xf32, #tpu.memory_space<smem>>
    %39 = vector.broadcast %38 : f32 to vector<2x256xf32>
    %40 = arith.addf %33, %39 : vector<2x256xf32>
    %41 = vector.shape_cast %40 : vector<2x256xf32> to vector<1x2x256xf32>
    %cst = arith.constant dense<0.000000e+00> : vector<1xf32>
    %42 = vector.multi_reduction <add>, %41, %cst [1, 2] : vector<1x2x256xf32> to vector<1xf32>
    %43 = vector.shape_cast %42 : vector<1xf32> to vector<1x1x1xf32>
    %44 = vector.extract %43[0, 0, 0] : f32 from vector<1x1x1xf32>
    %cst_25 = arith.constant 0.001953125 : f32
    %45 = arith.mulf %44, %cst_25 : f32
    %46 = vector.broadcast %45 : f32 to vector<2x256xf32>
    %47 = arith.subf %40, %46 : vector<2x256xf32>
    %48 = arith.mulf %47, %47 : vector<2x256xf32>
    %49 = vector.shape_cast %48 : vector<2x256xf32> to vector<1x2x256xf32>
    %cst_26 = arith.constant dense<0.000000e+00> : vector<1xf32>
    %50 = vector.multi_reduction <add>, %49, %cst_26 [1, 2] : vector<1x2x256xf32> to vector<1xf32>
    %51 = vector.shape_cast %50 : vector<1xf32> to vector<1x1x1xf32>
    %52 = vector.extract %51[0, 0, 0] : f32 from vector<1x1x1xf32>
    %cst_27 = arith.constant 0.001953125 : f32
    %53 = arith.mulf %52, %cst_27 : f32
    %cst_28 = arith.constant 9.99999974E-6 : f32
    %54 = arith.addf %53, %cst_28 : f32
    %55 = math.rsqrt %54 : f32
    %c0_29 = arith.constant 0 : index
    %56 = memref.load %arg3[%c0_29] : memref<2xf32, #tpu.memory_space<smem>>
    %57 = arith.mulf %55, %56 : f32
    %58 = vector.broadcast %57 : f32 to vector<2x256xf32>
    %59 = arith.mulf %47, %58 : vector<2x256xf32>
    %c0_30 = arith.constant 0 : index
    %60 = memref.load %arg4[%c0_30] : memref<2xf32, #tpu.memory_space<smem>>
    %61 = vector.broadcast %60 : f32 to vector<2x256xf32>
    %62 = arith.addf %59, %61 : vector<2x256xf32>
    %cst_31 = arith.constant 0.000000e+00 : f32
    %63 = vector.broadcast %cst_31 : f32 to vector<2x256xf32>
    %64 = arith.maximumf %62, %63 : vector<2x256xf32>
    %c1_32 = arith.constant 1 : index
    %65 = memref.load %arg2[%c1_32] : memref<2xf32, #tpu.memory_space<smem>>
    %66 = vector.broadcast %65 : f32 to vector<2x256xf32>
    %67 = arith.addf %37, %66 : vector<2x256xf32>
    %68 = vector.shape_cast %67 : vector<2x256xf32> to vector<1x2x256xf32>
    %cst_33 = arith.constant dense<0.000000e+00> : vector<1xf32>
    %69 = vector.multi_reduction <add>, %68, %cst_33 [1, 2] : vector<1x2x256xf32> to vector<1xf32>
    %70 = vector.shape_cast %69 : vector<1xf32> to vector<1x1x1xf32>
    %71 = vector.extract %70[0, 0, 0] : f32 from vector<1x1x1xf32>
    %cst_34 = arith.constant 0.001953125 : f32
    %72 = arith.mulf %71, %cst_34 : f32
    %73 = vector.broadcast %72 : f32 to vector<2x256xf32>
    %74 = arith.subf %67, %73 : vector<2x256xf32>
    %75 = arith.mulf %74, %74 : vector<2x256xf32>
    %76 = vector.shape_cast %75 : vector<2x256xf32> to vector<1x2x256xf32>
    %cst_35 = arith.constant dense<0.000000e+00> : vector<1xf32>
    %77 = vector.multi_reduction <add>, %76, %cst_35 [1, 2] : vector<1x2x256xf32> to vector<1xf32>
    %78 = vector.shape_cast %77 : vector<1xf32> to vector<1x1x1xf32>
    %79 = vector.extract %78[0, 0, 0] : f32 from vector<1x1x1xf32>
    %cst_36 = arith.constant 0.001953125 : f32
    %80 = arith.mulf %79, %cst_36 : f32
    %cst_37 = arith.constant 9.99999974E-6 : f32
    %81 = arith.addf %80, %cst_37 : f32
    %82 = math.rsqrt %81 : f32
    %c1_38 = arith.constant 1 : index
    %83 = memref.load %arg3[%c1_38] : memref<2xf32, #tpu.memory_space<smem>>
    %84 = arith.mulf %82, %83 : f32
    %85 = vector.broadcast %84 : f32 to vector<2x256xf32>
    %86 = arith.mulf %74, %85 : vector<2x256xf32>
    %c1_39 = arith.constant 1 : index
    %87 = memref.load %arg4[%c1_39] : memref<2xf32, #tpu.memory_space<smem>>
    %88 = vector.broadcast %87 : f32 to vector<2x256xf32>
    %89 = arith.addf %86, %88 : vector<2x256xf32>
    %cst_40 = arith.constant 0.000000e+00 : f32
    %90 = vector.broadcast %cst_40 : f32 to vector<2x256xf32>
    %91 = arith.maximumf %89, %90 : vector<2x256xf32>
    %92 = tpu.concatenate %64, %91 in 1 : vector<2x256xf32>, vector<2x256xf32> -> vector<2x512xf32>
    %c0_41 = arith.constant 0 : index
    %c0_42 = arith.constant 0 : index
    %93 = vector.load %arg5[%c0_41, %c0_42] : memref<512x256xf32, #tpu.memory_space<vmem>>, vector<512x256xf32>
    %cst_43 = arith.constant dense<0.000000e+00> : vector<2x256xf32>
    %94 = tpu.matmul %92, %93, %cst_43 {dimension_numbers = #tpu.dot_dimension_numbers<[1], [0], [0], [1], [0, 0, 1, 1], [], []>} : vector<2x512xf32>, vector<512x256xf32>, vector<2x256xf32> -> vector<2x256xf32>
    %c0_44 = arith.constant 0 : index
    %c0_45 = arith.constant 0 : index
    %95 = vector.load %arg6[%c0_44, %c0_45] : memref<1x256xf32, #tpu.memory_space<vmem>>, vector<1x256xf32>
    %96 = vector.broadcast %95 : vector<1x256xf32> to vector<2x256xf32>
    %97 = arith.addf %94, %96 : vector<2x256xf32>
    %c0_46 = arith.constant 0 : index
    %c0_47 = arith.constant 0 : index
    %98 = vector.load %arg7[%c0_46, %c0_47] : memref<2x256xf32, #tpu.memory_space<vmem>>, vector<2x256xf32>
    tpu.vector_store %arg7[%c0_46, %c0_47], %97 {strides = array<i32>} : memref<2x256xf32, #tpu.memory_space<vmem>>, vector<2x256xf32>,
    %99 = tpu.iota {dimensions = array<i32: 1>} : vector<2x256xi32>
    %c0_i32 = arith.constant 0 : i32
    %100 = vector.broadcast %c0_i32 : i32 to vector<2x256xi32>
    %101 = arith.cmpi sge, %99, %100 : vector<2x256xi32>
    %c13_i32 = arith.constant 13 : i32
    %102 = vector.broadcast %c13_i32 : i32 to vector<2x256xi32>
    %103 = arith.cmpi slt, %99, %102 : vector<2x256xi32>
    %104 = arith.andi %101, %103 : vector<2x256xi1>
    %cst_48 = arith.constant 0xFF800000 : f32
    %105 = vector.broadcast %cst_48 : f32 to vector<2x256xf32>
    %106 = arith.select %104, %97, %105 : vector<2x256xi1>, vector<2x256xf32>
    %c0_i32_49 = arith.constant 0 : i32
    %107 = vector.broadcast %c0_i32_49 : i32 to vector<2x256xi32>
    %108 = arith.subi %99, %107 : vector<2x256xi32>
    %c1073741824_i32 = arith.constant 1073741824 : i32
    %109 = vector.broadcast %c1073741824_i32 : i32 to vector<2x256xi32>
    %110 = arith.select %104, %108, %109 : vector<2x256xi1>, vector<2x256xi32>
    %c13_i32_50 = arith.constant 13 : i32
    %111 = vector.broadcast %c13_i32_50 : i32 to vector<2x256xi32>
    %112 = arith.cmpi sge, %99, %111 : vector<2x256xi32>
    %c27_i32 = arith.constant 27 : i32
    %113 = vector.broadcast %c27_i32 : i32 to vector<2x256xi32>
    %114 = arith.cmpi slt, %99, %113 : vector<2x256xi32>
    %115 = arith.andi %112, %114 : vector<2x256xi1>
    %cst_51 = arith.constant 0xFF800000 : f32
    %116 = vector.broadcast %cst_51 : f32 to vector<2x256xf32>
    %117 = arith.select %115, %97, %116 : vector<2x256xi1>, vector<2x256xf32>
    %c13_i32_52 = arith.constant 13 : i32
    %118 = vector.broadcast %c13_i32_52 : i32 to vector<2x256xi32>
    %119 = arith.subi %99, %118 : vector<2x256xi32>
    %c1073741824_i32_53 = arith.constant 1073741824 : i32
    %120 = vector.broadcast %c1073741824_i32_53 : i32 to vector<2x256xi32>
    %121 = arith.select %115, %119, %120 : vector<2x256xi1>, vector<2x256xi32>
    %c27_i32_54 = arith.constant 27 : i32
    %122 = vector.broadcast %c27_i32_54 : i32 to vector<2x256xi32>
    %123 = arith.cmpi sge, %99, %122 : vector<2x256xi32>
    %c42_i32 = arith.constant 42 : i32
    %124 = vector.broadcast %c42_i32 : i32 to vector<2x256xi32>
    %125 = arith.cmpi slt, %99, %124 : vector<2x256xi32>
    %126 = arith.andi %123, %125 : vector<2x256xi1>
    %cst_55 = arith.constant 0xFF800000 : f32
    %127 = vector.broadcast %cst_55 : f32 to vector<2x256xf32>
    %128 = arith.select %126, %97, %127 : vector<2x256xi1>, vector<2x256xf32>
    %c27_i32_56 = arith.constant 27 : i32
    %129 = vector.broadcast %c27_i32_56 : i32 to vector<2x256xi32>
    %130 = arith.subi %99, %129 : vector<2x256xi32>
    %c1073741824_i32_57 = arith.constant 1073741824 : i32
    %131 = vector.broadcast %c1073741824_i32_57 : i32 to vector<2x256xi32>
    %132 = arith.select %126, %130, %131 : vector<2x256xi1>, vector<2x256xi32>
    %c128_i32 = arith.constant 128 : i32
    %133 = vector.broadcast %c128_i32 : i32 to vector<2x256xi32>
    %134 = arith.cmpi sge, %99, %133 : vector<2x256xi32>
    %c143_i32 = arith.constant 143 : i32
    %135 = vector.broadcast %c143_i32 : i32 to vector<2x256xi32>
    %136 = arith.cmpi slt, %99, %135 : vector<2x256xi32>
    %137 = arith.andi %134, %136 : vector<2x256xi1>
    %cst_58 = arith.constant 0xFF800000 : f32
    %138 = vector.broadcast %cst_58 : f32 to vector<2x256xf32>
    %139 = arith.select %137, %97, %138 : vector<2x256xi1>, vector<2x256xf32>
    %c128_i32_59 = arith.constant 128 : i32
    %140 = vector.broadcast %c128_i32_59 : i32 to vector<2x256xi32>
    %141 = arith.subi %99, %140 : vector<2x256xi32>
    %c1073741824_i32_60 = arith.constant 1073741824 : i32
    %142 = vector.broadcast %c1073741824_i32_60 : i32 to vector<2x256xi32>
    %143 = arith.select %137, %141, %142 : vector<2x256xi1>, vector<2x256xi32>
    %144 = vector.shape_cast %106 : vector<2x256xf32> to vector<1x2x256xf32>
    %145 = vector.shape_cast %117 : vector<2x256xf32> to vector<1x2x256xf32>
    %146 = vector.shape_cast %128 : vector<2x256xf32> to vector<1x2x256xf32>
    %147 = vector.shape_cast %139 : vector<2x256xf32> to vector<1x2x256xf32>
    %148 = tpu.concatenate %144, %145, %146, %147 in 0 : vector<1x2x256xf32>, vector<1x2x256xf32>, vector<1x2x256xf32>, vector<1x2x256xf32> -> vector<4x2x256xf32>
    %149 = vector.shape_cast %110 : vector<2x256xi32> to vector<1x2x256xi32>
    %150 = vector.shape_cast %121 : vector<2x256xi32> to vector<1x2x256xi32>
    %151 = vector.shape_cast %132 : vector<2x256xi32> to vector<1x2x256xi32>
    %152 = vector.shape_cast %143 : vector<2x256xi32> to vector<1x2x256xi32>
    %153 = tpu.concatenate %149, %150, %151, %152 in 0 : vector<1x2x256xi32>, vector<1x2x256xi32>, vector<1x2x256xi32>, vector<1x2x256xi32> -> vector<4x2x256xi32>
    %cst_61 = arith.constant dense<0xFF800000> : vector<4x2xf32>
    %154 = vector.multi_reduction <maximumf>, %148, %cst_61 [2] : vector<4x2x256xf32> to vector<4x2xf32>
    %155 = vector.shape_cast %154 : vector<4x2xf32> to vector<4x2x1xf32>
    %156 = vector.broadcast %155 : vector<4x2x1xf32> to vector<4x2x256xf32>
    %157 = arith.cmpf oeq, %148, %156 : vector<4x2x256xf32>
    %c1073741824_i32_62 = arith.constant 1073741824 : i32
    %158 = vector.broadcast %c1073741824_i32_62 : i32 to vector<4x2x256xi32>
    %159 = arith.select %157, %153, %158 : vector<4x2x256xi1>, vector<4x2x256xi32>
    %cst_63 = arith.constant dense<2147483647> : vector<4x2xi32>
    %160 = vector.multi_reduction <minsi>, %159, %cst_63 [2] : vector<4x2x256xi32> to vector<4x2xi32>
    %161 = vector.shape_cast %160 : vector<4x2xi32> to vector<4x2x1xi32>
    %162 = vector.extract_strided_slice %161 {offsets = [0, 0, 0], sizes = [1, 2, 1], strides = [1, 1, 1]} : vector<4x2x1xi32> to vector<1x2x1xi32>
    %163 = vector.shape_cast %162 : vector<1x2x1xi32> to vector<2x1xi32>
    %164 = vector.extract_strided_slice %161 {offsets = [1, 0, 0], sizes = [1, 2, 1], strides = [1, 1, 1]} : vector<4x2x1xi32> to vector<1x2x1xi32>
    %165 = vector.shape_cast %164 : vector<1x2x1xi32> to vector<2x1xi32>
    %c1_i32 = arith.constant 1 : i32
    %166 = vector.broadcast %c1_i32 : i32 to vector<2x1xi32>
    %167 = arith.addi %163, %166 : vector<2x1xi32>
    %168 = arith.maxsi %165, %167 : vector<2x1xi32>
    %169 = vector.extract_strided_slice %161 {offsets = [2, 0, 0], sizes = [1, 2, 1], strides = [1, 1, 1]} : vector<4x2x1xi32> to vector<1x2x1xi32>
    %170 = vector.shape_cast %169 : vector<1x2x1xi32> to vector<2x1xi32>
    %c1_i32_64 = arith.constant 1 : i32
    %171 = vector.broadcast %c1_i32_64 : i32 to vector<2x1xi32>
    %172 = arith.addi %168, %171 : vector<2x1xi32>
    %173 = arith.maxsi %170, %172 : vector<2x1xi32>
    %174 = vector.extract_strided_slice %161 {offsets = [3, 0, 0], sizes = [1, 2, 1], strides = [1, 1, 1]} : vector<4x2x1xi32> to vector<1x2x1xi32>
    %175 = vector.shape_cast %174 : vector<1x2x1xi32> to vector<2x1xi32>
    %176 = vector.extract_strided_slice %99 {offsets = [0, 0], sizes = [2, 128], strides = [1, 1]} : vector<2x256xi32> to vector<2x128xi32>
    %c0_i32_65 = arith.constant 0 : i32
    %177 = vector.broadcast %c0_i32_65 : i32 to vector<2x128xi32>
    %178 = arith.cmpi eq, %176, %177 : vector<2x128xi32>
    %c1_i32_66 = arith.constant 1 : i32
    %179 = vector.broadcast %c1_i32_66 : i32 to vector<2x128xi32>
    %180 = arith.cmpi eq, %176, %179 : vector<2x128xi32>
    %c2_i32 = arith.constant 2 : i32
    %181 = vector.broadcast %c2_i32 : i32 to vector<2x128xi32>
    %182 = arith.cmpi eq, %176, %181 : vector<2x128xi32>
    %c3_i32 = arith.constant 3 : i32
    %183 = vector.broadcast %c3_i32 : i32 to vector<2x128xi32>
    %184 = arith.cmpi eq, %176, %183 : vector<2x128xi32>
    %c0_i32_67 = arith.constant 0 : i32
    %185 = vector.shape_cast %175 : vector<2x1xi32> to vector<2x1xi32>
    %186 = vector.broadcast %185 : vector<2x1xi32> to vector<2x128xi32>
    %187 = vector.broadcast %c0_i32_67 : i32 to vector<2x128xi32>
    %188 = arith.select %184, %186, %187 : vector<2x128xi1>, vector<2x128xi32>
    %189 = vector.shape_cast %173 : vector<2x1xi32> to vector<2x1xi32>
    %190 = vector.broadcast %189 : vector<2x1xi32> to vector<2x128xi32>
    %191 = arith.select %182, %190, %188 : vector<2x128xi1>, vector<2x128xi32>
    %192 = vector.shape_cast %168 : vector<2x1xi32> to vector<2x1xi32>
    %193 = vector.broadcast %192 : vector<2x1xi32> to vector<2x128xi32>
    %194 = arith.select %180, %193, %191 : vector<2x128xi1>, vector<2x128xi32>
    %195 = vector.shape_cast %163 : vector<2x1xi32> to vector<2x1xi32>
    %196 = vector.broadcast %195 : vector<2x1xi32> to vector<2x128xi32>
    %197 = arith.select %178, %196, %194 : vector<2x128xi1>, vector<2x128xi32>
    %c0_68 = arith.constant 0 : index
    %c0_69 = arith.constant 0 : index
    %198 = vector.load %arg8[%c0_68, %c0_69] : memref<2x128xi32, #tpu.memory_space<vmem>>, vector<2x128xi32>
    tpu.vector_store %arg8[%c0_68, %c0_69], %197 {strides = array<i32>} : memref<2x128xi32, #tpu.memory_space<vmem>>, vector<2x128xi32>,
    return
  }
}

</mosaic_0001>

<bundles_post_ra>
// kernel: tpu_custom_call.1
= control target key start
LH: loop header
LB: loop body
LE: loop exit
PB: predicated region body
PF: predicated region fallthrough
CT: control target
= control target key end

     0   :  { %14 = vsyncpa [#allocation3], 0  ;;  %s1490_s0 = inlined_call_operand.hbm [shape: f32[2,4,256], index: 0, kind: input, shape index: {}]   ;;  %s1491_s1 = inlined_call_operand.vmem [shape: f32[2,4], index: 1, kind: input, shape index: {}]   ;;  %s1492_s2 = inlined_call_operand.vmem [shape: f32[2], index: 2, kind: input, shape index: {}]   ;;  %s1493_s3 = inlined_call_operand.vmem [shape: f32[2], index: 3, kind: input, shape index: {}]   ;;  %s1494_s4 = inlined_call_operand.vmem [shape: f32[2], index: 4, kind: input, shape index: {}]   ;;  %s1495_s5 = inlined_call_operand.hbm [shape: f32[512,256], index: 5, kind: input, shape index: {}]   ;;  %s1496_s6 = inlined_call_operand.vmem [shape: f32[1,256], index: 6, kind: input, shape index: {}]   ;;  %s1497_s7 = inlined_call_operand.hbm [shape: f32[2,256], index: 7, kind: output, shape index: {0}]   ;;  %s1498_s8 = inlined_call_operand.hbm [shape: s32[2,128], index: 8, kind: output, shape index: {1}]  }
   0x1   :  { %15 = vsyncpa [#allocation5], 0 }
   0x2   :  { %16 = vsyncpa [#allocation8], 0 }
   0x3   :  { %17 = vsyncpa [#allocation11], 0 }
   0x4   :  { %18 = vsyncpa [#allocation13], 0 }
   0x5   :  { %19 = vsyncpa [#allocation4], 0  ;;  %s49_s29 = sshll.u32 %s1492_s2, 4  ;;  %s50_s29 = int_to_ptr.vmem [resolvable:$true] %s49_s29 }
   0x6   :  { %20 = vsyncpa [#allocation16], 0  ;;  %s1108_s30 = scalar_lea.vmem %s50_s29, 16  ;;  %p1113_p1 = scmp.lt.s32.totalorder %s50_s29, %s50_s29 }
   0x7   :  { %p1109_p0 = scmp.ne.s32.totalorder %s50_s29, %s1108_s30  ;;  %p1114_p2 = scmp.lt.s32.totalorder %s1108_s30, %s1108_s30 }
   0x9   :  { %p1115_p3 = por %p1114_p2, %p1113_p1 }
   0xb   :  { %p1116_p4 = pnand %p1115_p3, %p1109_p0 }
   0xd   :  { %1119 = shalt.err (!%p1116_p4)
}
   0xe   :  { %s1258_s9 = smov [#allocation7]   ;;  %s1259_s10 = smov [#allocation2]  }
   0xf   :  { %52 = dma.vmem_to_smem %s50_s29, 16, %s1258_s9, [#allocation8]  }
  0x10   :  { %s26_s11 = sshll.u32 %s1259_s10, 4  ;;  %s1120_s14 = scalar_lea.hbm %s1490_s0, 256  ;;  %s27_s11 = int_to_ptr.vmem [resolvable:$true] %s26_s11 }
  0x11   :  { %p1121_p5 = scmp.ne.s32.totalorder %s1490_s0, %s1120_s14  ;;  %p1124_p6 = scmp.lt.u32.totalorder %s1120_s14, %s1490_s0 }
  0x13   :  { %p1126_p7 = pnand %p1124_p6, %p1121_p5 }
  0x15   :  { %1129 = shalt.err (!%p1126_p7)
}
  0x16   :  { %s1130_s18 = scalar_lea.vmem %s27_s11, 256  ;;  %p1135_p9 = scmp.lt.s32.totalorder %s27_s11, %s27_s11 }
  0x17   :  { %p1131_p8 = scmp.ne.s32.totalorder %s27_s11, %s1130_s18  ;;  %p1136_p10 = scmp.lt.s32.totalorder %s1130_s18, %s1130_s18 }
  0x19   :  { %p1137_p11 = por %p1136_p10, %p1135_p9 }
  0x1b   :  { %p1138_p12 = pnand %p1137_p11, %p1131_p8 }
  0x1d   :  { %1141 = shalt.err (!%p1138_p12)
}
  0x1e   :  { %s1260_s19 = smov 128   ;;  %s1261_s20 = smov 8  }
  0x1f   :  { %32 = dma.hbm_to_vmem [thread:$0]  %s1490_s0, 256, %s27_s11, [#allocation3], %s1260_s19, %s1260_s19, %s1261_s20  }
  0x20   :  { %s39_s25 = sshll.u32 %s1491_s1, 4  ;;  %s59_s28 = sshll.u32 %s1493_s3, 4  ;;  %s40_s25 = int_to_ptr.vmem [resolvable:$true] %s39_s25  ;;  %s60_s28 = int_to_ptr.vmem [resolvable:$true] %s59_s28 }
  0x21   :  { %s1142_s29 = scalar_lea.vmem %s40_s25, 32  ;;  %p1147_p0 = scmp.lt.s32.totalorder %s40_s25, %s40_s25 }
  0x22   :  { %p1143_p13 = scmp.ne.s32.totalorder %s40_s25, %s1142_s29  ;;  %p1148_p1 = scmp.lt.s32.totalorder %s1142_s29, %s1142_s29 }
  0x24   :  { %p1149_p2 = por %p1148_p1, %p1147_p0 }
  0x26   :  { %p1150_p3 = pnand %p1149_p2, %p1143_p13 }
  0x28   :  { %1153 = shalt.err (!%p1150_p3)
}
  0x29   :  { %s1262_s30 = smov [#allocation6]   ;;  %s1154_s0 = scalar_lea.vmem %s60_s28, 16 }
  0x2a   :  { %42 = dma.vmem_to_smem %s40_s25, 32, %s1262_s30, [#allocation5]  }
  0x2b   :  { %p1155_p4 = scmp.ne.s32.totalorder %s60_s28, %s1154_s0  ;;  %p1159_p5 = scmp.lt.s32.totalorder %s60_s28, %s60_s28 }
  0x2c   :  { %p1160_p6 = scmp.lt.s32.totalorder %s1154_s0, %s1154_s0 }
  0x2e   :  { %p1161_p7 = por %p1160_p6, %p1159_p5 }
  0x30   :  { %p1162_p8 = pnand %p1161_p7, %p1155_p4 }
  0x32   :  { %1165 = shalt.err (!%p1162_p8)
}
  0x33   :  { %s1263_s1 = smov [#allocation9]   ;;  %s69_s10 = sshll.u32 %s1494_s4, 4  ;;  %s70_s10 = int_to_ptr.vmem [resolvable:$true] %s69_s10 }
  0x34   :  { %62 = dma.vmem_to_smem %s60_s28, 16, %s1263_s1, [#allocation8]  }
  0x35   :  { %s1166_s11 = scalar_lea.vmem %s70_s10, 16  ;;  %p1171_p10 = scmp.lt.s32.totalorder %s70_s10, %s70_s10 }
  0x36   :  { %p1167_p9 = scmp.ne.s32.totalorder %s70_s10, %s1166_s11  ;;  %p1172_p11 = scmp.lt.s32.totalorder %s1166_s11, %s1166_s11 }
  0x38   :  { %p1173_p12 = por %p1172_p11, %p1171_p10 }
  0x3a   :  { %p1174_p13 = pnand %p1173_p12, %p1167_p9 }
  0x3c   :  { %1177 = shalt.err (!%p1174_p13)
}
  0x3d   :  { %s1264_s12 = smov [#allocation10]   ;;  %s1265_s13 = smov [#allocation12]  }
  0x3e   :  { %72 = dma.vmem_to_smem %s70_s10, 16, %s1264_s12, [#allocation11]  }
  0x3f   :  { %s78_s14 = sshll.u32 %s1265_s13, 4  ;;  %s1178_s16 = scalar_lea.hbm %s1495_s5, 16384  ;;  %s79_s14 = int_to_ptr.vmem [resolvable:$true] %s78_s14 }
  0x40   :  { %p1179_p0 = scmp.ne.s32.totalorder %s1495_s5, %s1178_s16  ;;  %p1182_p1 = scmp.lt.u32.totalorder %s1178_s16, %s1495_s5 }
  0x42   :  { %p1184_p2 = pnand %p1182_p1, %p1179_p0 }
  0x44   :  { %1187 = shalt.err (!%p1184_p2)
}
  0x45   :  { %s1188_s20 = scalar_lea.vmem %s79_s14, 16384  ;;  %p1193_p4 = scmp.lt.s32.totalorder %s79_s14, %s79_s14 }
  0x46   :  { %p1189_p3 = scmp.ne.s32.totalorder %s79_s14, %s1188_s20  ;;  %p1194_p5 = scmp.lt.s32.totalorder %s1188_s20, %s1188_s20 }
  0x48   :  { %p1195_p6 = por %p1194_p5, %p1193_p4 }
  0x4a   :  { %p1196_p7 = pnand %p1195_p6, %p1189_p3 }
  0x4c   :  { %1199 = shalt.err (!%p1196_p7)
}
  0x4d   :  { %s1266_s21 = smov 256   ;;  %s1267_s22 = smov 16  }
  0x4e   :  { %84 = dma.hbm_to_vmem [thread:$0]  %s1495_s5, 16384, %s79_s14, [#allocation13], %s1266_s21, %s1266_s21, %s1267_s22  }
  0x4f   :  { %1244 = dma.done.wait [#allocation3], 256  }
  0x50   :  { %1245 = vsyncadd [#allocation3], 4294967040 }
  0x51   :  { %1246 = dma.done.wait [#allocation5], 32  }
  0x52   :  { %1247 = vsyncadd [#allocation5], 4294967264 }
  0x53   :  { %1248 = dma.done.wait [#allocation8], 32  }
  0x54   :  { %1249 = vsyncadd [#allocation8], 4294967264 }
  0x55   :  { %1250 = dma.done.wait [#allocation11], 16  }
  0x56   :  { %1251 = vsyncadd [#allocation11], 4294967280 }
  0x57   :  { %1252 = dma.done.wait [#allocation13], 16384  }
  0x58   :  { %1253 = vsyncadd [#allocation13], 4294950912 }
  0x59   :  { %105 = sfence }
  0x5a   :  { %s109_s25 = sld [smem:[#allocation6]]  ;;  %s927_s26 = sld [smem:[#allocation6 + $0x1]]  ;;  %v106_v0 = vld [vmem:[#allocation2] ss:$4 sm:$0x3]  ;;  %v175_v5 = vlaneseq  ;;  %vm196_vm0 = vcmask 1041408  }
  0x5b   :  { %v108_v1 = vld [vmem:[#allocation2 + $0x8] ss:$4 sm:$0x3]  ;;  %v118_v2 = vld [vmem:[#allocation2 + $0x1] ss:$4 sm:$0x3] }
  0x5c   :  { %s929_s27 = sld [smem:[#allocation6 + $0x2]]  ;;  %v120_v3 = vld [vmem:[#allocation2 + $0x9] ss:$4 sm:$0x3]  ;;  %s931_s28 = sld [smem:[#allocation6 + $0x3]]  ;;  %v1354_v24 = vshrl.u32 %v175_v5, 7 }
  0x5d   :  { %s165_s5 = sld [smem:[#allocation7]]  ;;  %v134_v9 = vld [vmem:[#allocation2 + $0x2] ss:$4 sm:$0x3]  ;;  %v1268_v11 = vmov 1966171168  }
  0x5e   :  { %v136_v10 = vld [vmem:[#allocation2 + $0xa] ss:$4 sm:$0x3]  ;;  %v173_v12 = vunpack.c.l.s4 %v1268_v11  ;;  %v150_v16 = vld [vmem:[#allocation2 + $0x3] ss:$4 sm:$0x3] }
  0x5f   :  { %v152_v17 = vld [vmem:[#allocation2 + $0xb] ss:$4 sm:$0x3]  ;;  %s926_s29 = sld [smem:[#allocation6 + $0x80]]  ;;  %s928_s30 = sld [smem:[#allocation6 + $0x81]] }
  0x60   :  { %v110_v4 = vstv %s109_s25  ;;  %v122_v8 = vstv %s927_s26  ;;  %v174_v23 = vunpack.c.0.s8 %v173_v12  ;;  %s930_s0 = sld [smem:[#allocation6 + $0x82]]  ;;  %s932_s1 = sld [smem:[#allocation6 + $0x83]] }
  0x61   :  { %v111_v6 = vmul.f32 %v110_v4, %v106_v0  ;;  %v112_v7 = vmul.f32 %v110_v4, %v108_v1  ;;  %v123_v13 = vmul.f32 %v122_v8, %v118_v2  ;;  %v124_v14 = vmul.f32 %v122_v8, %v120_v3  ;;  %s933_s3 = sld [smem:[#allocation7 + $0x1]]  ;;  %s259_s14 = sld [smem:[#allocation9]] }
  0x62   :  { %v138_v15 = vstv %s929_s27  ;;  %v154_v22 = vstv %s931_s28  ;;  %v1357_v34 = vsub.s32 %v174_v23, %v1354_v24  ;;  %s264_s15 = sld [smem:[#allocation10]]  ;;  %s934_s21 = sld [smem:[#allocation9 + $0x1]] }
  0x63   :  { %v125_v18 = vadd.f32 %v123_v13, %v111_v6  ;;  %v126_v19 = vadd.f32 %v124_v14, %v112_v7  ;;  %v139_v20 = vmul.f32 %v138_v15, %v134_v9  ;;  %v140_v21 = vmul.f32 %v138_v15, %v136_v10  ;;  %s935_s22 = sld [smem:[#allocation10 + $0x1]] }
  0x64   :  { %v155_v27 = vmul.f32 %v154_v22, %v150_v16  ;;  %v156_v28 = vmul.f32 %v154_v22, %v152_v17  ;;  %v166_v29 = vstv %s165_s5 }
  0x65   :  { %v141_v25 = vadd.f32 %v139_v20, %v125_v18  ;;  %v142_v26 = vadd.f32 %v140_v21, %v126_v19  ;;  %v114_v43 = vstv %s926_s29  ;;  %v128_v44 = vstv %s928_s30 }
  0x66   :  { %v115_v45 = vmul.f32 %v114_v43, %v106_v0  ;;  %v116_v46 = vmul.f32 %v114_v43, %v108_v1  ;;  %v129_v47 = vmul.f32 %v128_v44, %v118_v2  ;;  %v130_v48 = vmul.f32 %v128_v44, %v120_v3  ;;  %v439_v43 = vld [vmem:[#allocation12 + $0x58] sm:$0xff] }
  0x67   :  { %v157_v30 = vadd.f32 %v155_v27, %v141_v25  ;;  %v158_v31 = vadd.f32 %v156_v28, %v142_v26  ;;  %v144_v49 = vstv %s930_s0  ;;  %v160_v50 = vstv %s932_s1 }
  0x68   :  { %v131_v51 = vadd.f32 %v129_v47, %v115_v45  ;;  %v132_v52 = vadd.f32 %v130_v48, %v116_v46  ;;  %v145_v53 = vmul.f32 %v144_v49, %v134_v9  ;;  %v146_v54 = vmul.f32 %v144_v49, %v136_v10  ;;  %v436_v46 = vld [vmem:[#allocation12 + $0x40] sm:$0xff]  ;;  %v438_v47 = vld [vmem:[#allocation12 + $0x50] sm:$0xff]  ;;  %v441_v48 = vld [vmem:[#allocation12 + $0x68] sm:$0xff] }
  0x69   :  { %v167_v32 = vadd.f32 %v166_v29, %v157_v30  ;;  %v168_v33 = vadd.f32 %v166_v29, %v158_v31  ;;  %v161_v55 = vmul.f32 %v160_v50, %v150_v16  ;;  %v162_v56 = vmul.f32 %v160_v50, %v152_v17  ;;  %v429_v30 = vld [vmem:[#allocation12 + $0x8] sm:$0xff]  ;;  %v431_v31 = vld [vmem:[#allocation12 + $0x18] sm:$0xff] }
  0x6a   :  { %v147_v57 = vadd.f32 %v145_v53, %v131_v51  ;;  %v148_v58 = vadd.f32 %v146_v54, %v132_v52  ;;  %v271_v59 = vstv %s933_s3  ;;  %v443_v49 = vld [vmem:[#allocation12 + $0x78] sm:$0xff]  ;;  %v956_v50 = vpack.c.bf16 %v438_v47, %v436_v46  ;;  %v440_v52 = vld [vmem:[#allocation12 + $0x60] sm:$0xff]  ;;  %v442_v53 = vld [vmem:[#allocation12 + $0x70] sm:$0xff] }
  0x6b   :  { %v171_v35 = vcombine.low %v167_v32, %v168_v33  ;;  %v958_v51 = vpack.c.bf16 %v443_v49, %v441_v48  ;;  %v445_v54 = vld [vmem:[#allocation12 + $0x88] sm:$0xff]  ;;  %v479_v49 = vld [vmem:[#allocation12 + $0x198] sm:$0xff] }
  0x6c   :  { %v163_v60 = vadd.f32 %v161_v55, %v147_v57  ;;  %v164_v61 = vadd.f32 %v162_v56, %v148_v58  ;;  %v447_v55 = vld [vmem:[#allocation12 + $0x98] sm:$0xff]  ;;  %v960_v56 = vpack.c.bf16 %v442_v53, %v440_v52  ;;  %v444_v58 = vld [vmem:[#allocation12 + $0x80] sm:$0xff]  ;;  %v477_v48 = vld [vmem:[#allocation12 + $0x188] sm:$0xff] }
  0x6d   :  { %v178_v36 = vrot.slane %v171_v35, %v1357_v34  ;;  %v430_v35 = vld [vmem:[#allocation12 + $0x10] sm:$0xff]  ;;  %v962_v57 = vpack.c.bf16 %v447_v55, %v445_v54 }
  0x6e   :  { %v1364_v62 = vadd.f32 %v271_v59, %v163_v60  ;;  %v1366_v63 = vadd.f32 %v271_v59, %v164_v61  ;;  %v446_v59 = vld [vmem:[#allocation12 + $0x90] sm:$0xff]  ;;  %v449_v60 = vld [vmem:[#allocation12 + $0xa8] sm:$0xff]  ;;  %v451_v61 = vld [vmem:[#allocation12 + $0xb8] sm:$0xff] }
  0x6f   :  { %v179_v37 = vcombine.high %v178_v36, %v178_v36  ;;  %v186_v38 = vrot.slane %v178_v36, %v1357_v34  ;;  %v433_v36 = vld [vmem:[#allocation12 + $0x28] sm:$0xff]  ;;  %v478_v52 = vld [vmem:[#allocation12 + $0x190] sm:$0xff] }
  0x70   :  { %v276_v0 = vcombine.low %v1364_v62, %v1366_v63 }
  0x71   :  { %v193_v39 = vrot.slane %v179_v37, %v1357_v34  ;;  %v197_v40 = vsel %vm196_vm0, %v186_v38, 0.0  ;;  %v435_v37 = vld [vmem:[#allocation12 + $0x38] sm:$0xff] }
  0x72   :  { %v283_v1 = vrot.slane %v276_v0, %v1357_v34  ;;  %v964_v0 = vpack.c.bf16 %v446_v59, %v444_v58  ;;  %v480_v59 = vld [vmem:[#allocation12 + $0x1a0] sm:$0xff] }
  0x73   :  { %v198_v41 = vsel %vm196_vm0, %v193_v39, 0.0  ;;  %v950_v39 = vpack.c.bf16 %v435_v37, %v433_v36  ;;  %v468_v37 = vld [vmem:[#allocation12 + $0x140] sm:$0xff] }
  0x74   :  { %v199_v42 = vadd.f32 %v198_v41, %v197_v40  ;;  %v284_v2 = vcombine.high %v283_v1, %v283_v1  ;;  %v291_v3 = vrot.slane %v283_v1, %v1357_v34  ;;  %v432_v40 = vld [vmem:[#allocation12 + $0x20] sm:$0xff]  ;;  %v434_v41 = vld [vmem:[#allocation12 + $0x30] sm:$0xff]  ;;  %v966_v1 = vpack.c.bf16 %v451_v61, %v449_v60 }
  0x75   :  { %v952_v44 = vpack.c.bf16 %v434_v41, %v432_v40  ;;  %v475_v40 = vld [vmem:[#allocation12 + $0x178] sm:$0xff]  ;;  %v482_v60 = vld [vmem:[#allocation12 + $0x1b0] sm:$0xff] }
  0x76   :  { %200 = vadd.xlane.f32.xlu0 %v199_v42  ;;  %v298_v4 = vrot.slane %v284_v2, %v1357_v34  ;;  %v301_v6 = vsel %vm196_vm0, %v291_v3, 0.0  ;;  %v437_v42 = vld [vmem:[#allocation12 + $0x48] sm:$0xff]  ;;  %v448_v2 = vld [vmem:[#allocation12 + $0xa0] sm:$0xff]  ;;  %v450_v3 = vld [vmem:[#allocation12 + $0xb0] sm:$0xff] }
  0x77   :  { %v954_v45 = vpack.c.bf16 %v439_v43, %v437_v42  ;;  %v472_v43 = vld [vmem:[#allocation12 + $0x160] sm:$0xff] }
  0x78   :  { %v302_v7 = vsel %vm196_vm0, %v298_v4, 0.0  ;;  %v453_v4 = vld [vmem:[#allocation12 + $0xc8] sm:$0xff] }
  0x79   :  { %v303_v8 = vadd.f32 %v302_v7, %v301_v6  ;;  %v455_v6 = vld [vmem:[#allocation12 + $0xd8] sm:$0xff]  ;;  %v968_v7 = vpack.c.bf16 %v450_v3, %v448_v2  ;;  %v485_v2 = vld [vmem:[#allocation12 + $0x1c8] sm:$0xff] }
  0x7a   :  { %v487_v3 = vld [vmem:[#allocation12 + $0x1d8] sm:$0xff] }
  0x7b   :  { %304 = vadd.xlane.f32.xlu1 %v303_v8  ;;  %v970_v8 = vpack.c.bf16 %v455_v6, %v453_v4  ;;  %v484_v4 = vld [vmem:[#allocation12 + $0x1c0] sm:$0xff]  ;;  %v1002_v6 = vpack.c.bf16 %v487_v3, %v485_v2 }
 0x103   :  { %v201_v9 = vpop.xlane.xlu0 %200 }
 0x104   :  { %v202_v10 = vrot.slane %v201_v9, 4 }
 0x106   :  { %v203_v11 = vadd.f32 %v202_v10, %v201_v9  ;;  %v452_v9 = vld [vmem:[#allocation12 + $0xc0] sm:$0xff]  ;;  %v454_v10 = vld [vmem:[#allocation12 + $0xd0] sm:$0xff] }
 0x108   :  { %v204_v12 = vrot.slane %v203_v11, 2 }
 0x10a   :  { %v205_v13 = vadd.f32 %v204_v12, %v203_v11  ;;  %v457_v11 = vld [vmem:[#allocation12 + $0xe8] sm:$0xff]  ;;  %v459_v12 = vld [vmem:[#allocation12 + $0xf8] sm:$0xff] }
 0x10c   :  { %v206_v14 = vrot.slane %v205_v13, 1 }
 0x10e   :  { %v207_v15 = vadd.f32 %v206_v14, %v205_v13  ;;  %v972_v13 = vpack.c.bf16 %v454_v10, %v452_v9  ;;  %v974_v14 = vpack.c.bf16 %v459_v12, %v457_v11  ;;  %v491_v9 = vld [vmem:[#allocation12 + $0x1f8] sm:$0xff] }
 0x110   :  { %1078 = vpush %v207_v15  ;;  %v456_v15 = vld [vmem:[#allocation12 + $0xe0] sm:$0xff] }
 0x141   :  { %s1079_s9 = spop %1078 }
 0x142   :  { %s209_s10 = smul.f32 0.001953125, %s1079_s9 }
 0x144   :  { %v210_v16 = vstv %s209_s10 }
 0x145   :  { %v1375_v17 = vsub.f32 %v167_v32, %v210_v16  ;;  %v1377_v18 = vsub.f32 %v168_v33, %v210_v16  ;;  %v428_v32 = vld [vmem:[#allocation12] sm:$0xff]  ;;  %v946_v33 = vpack.c.bf16 %v431_v31, %v429_v30  ;;  %v458_v16 = vld [vmem:[#allocation12 + $0xf0] sm:$0xff] }
 0x146   :  { %v948_v38 = vpack.c.bf16 %v430_v35, %v428_v32  ;;  %v464_v30 = vld [vmem:[#allocation12 + $0x120] sm:$0xff]  ;;  %v466_v31 = vld [vmem:[#allocation12 + $0x130] sm:$0xff]  ;;  %v469_v32 = vld [vmem:[#allocation12 + $0x148] sm:$0xff] }
 0x147   :  { %v213_v19 = vmul.f32 %v1375_v17, %v1375_v17  ;;  %v214_v20 = vmul.f32 %v1377_v18, %v1377_v18  ;;  %947 = vmatprep.subr.bf16.mxu1 %v946_v33  ;;  %v471_v33 = vld [vmem:[#allocation12 + $0x158] sm:$0xff]  ;;  %v984_v35 = vpack.c.bf16 %v466_v31, %v464_v30 }
 0x148   :  { %949 = vmatpush1.bf16.msra.mxu1 %v948_v38  ;;  %v986_v36 = vpack.c.bf16 %v471_v33, %v469_v32  ;;  %v470_v38 = vld [vmem:[#allocation12 + $0x150] sm:$0xff] }
 0x149   :  { %v217_v21 = vcombine.low %v213_v19, %v214_v20  ;;  %951 = vmatprep.subr.bf16.mxu1 %v950_v39  ;;  %v461_v19 = vld [vmem:[#allocation12 + $0x108] sm:$0xff]  ;;  %v463_v20 = vld [vmem:[#allocation12 + $0x118] sm:$0xff]  ;;  %v988_v41 = vpack.c.bf16 %v470_v38, %v468_v37 }
 0x14a   :  { %v473_v39 = vld [vmem:[#allocation12 + $0x168] sm:$0xff] }
 0x14b   :  { %v224_v22 = vrot.slane %v217_v21, %v1357_v34  ;;  %v976_v21 = vpack.c.bf16 %v458_v16, %v456_v15  ;;  %v990_v42 = vpack.c.bf16 %v475_v40, %v473_v39  ;;  %v305_v16 = vpop.xlane.xlu1 %304 }
 0x14c   :  { %953 = vmatpush1.bf16.msra.mxu1 %v952_v44  ;;  %v474_v44 = vld [vmem:[#allocation12 + $0x170] sm:$0xff] }
 0x14d   :  { %v225_v23 = vcombine.high %v224_v22, %v224_v22  ;;  %v232_v25 = vrot.slane %v224_v22, %v1357_v34  ;;  %955 = vmatprep.subr.bf16.mxu1 %v954_v45  ;;  %v978_v22 = vpack.c.bf16 %v463_v20, %v461_v19  ;;  %v992_v45 = vpack.c.bf16 %v474_v44, %v472_v43 }
 0x14e   :  { %v306_v19 = vrot.slane %v305_v16, 4 }
 0x14f   :  { %v239_v26 = vrot.slane %v225_v23, %v1357_v34  ;;  %v242_v27 = vsel %vm196_vm0, %v232_v25, 0.0  ;;  %v460_v23 = vld [vmem:[#allocation12 + $0x100] sm:$0xff]  ;;  %v462_v25 = vld [vmem:[#allocation12 + $0x110] sm:$0xff] }
 0x150   :  { %957 = vmatpush1.bf16.msra.mxu1 %v956_v50  ;;  %v994_v50 = vpack.c.bf16 %v479_v49, %v477_v48  ;;  %v307_v20 = vadd.f32 %v306_v19, %v305_v16  ;;  %v508_v19 = vld [vmem:[#allocation12 + $0x280] sm:$0xff] }
 0x151   :  { %v243_v28 = vsel %vm196_vm0, %v239_v26, 0.0  ;;  %959 = vmatprep.subr.bf16.mxu1 %v958_v51  ;;  %v465_v26 = vld [vmem:[#allocation12 + $0x128] sm:$0xff]  ;;  %v476_v51 = vld [vmem:[#allocation12 + $0x180] sm:$0xff] }
 0x152   :  { %v244_v29 = vadd.f32 %v243_v28, %v242_v27  ;;  %v467_v27 = vld [vmem:[#allocation12 + $0x138] sm:$0xff]  ;;  %v980_v28 = vpack.c.bf16 %v462_v25, %v460_v23  ;;  %v996_v54 = vpack.c.bf16 %v478_v52, %v476_v51  ;;  %v493_v51 = vld [vmem:[#allocation12 + $0x208] sm:$0xff] }
 0x153   :  { %v495_v52 = vld [vmem:[#allocation12 + $0x218] sm:$0xff] }
 0x154   :  { %245 = vadd.xlane.f32.xlu0 %v244_v29  ;;  %961 = vmatpush1.bf16.msra.mxu1 %v960_v56  ;;  %v982_v29 = vpack.c.bf16 %v467_v27, %v465_v26  ;;  %v481_v56 = vld [vmem:[#allocation12 + $0x1a8] sm:$0xff] }
 0x155   :  { %963 = vmatprep.subr.bf16.mxu1 %v962_v57  ;;  %v483_v57 = vld [vmem:[#allocation12 + $0x1b8] sm:$0xff] }
 0x156   :  { %v998_v58 = vpack.c.bf16 %v483_v57, %v481_v56  ;;  %v497_v56 = vld [vmem:[#allocation12 + $0x228] sm:$0xff]  ;;  %v499_v57 = vld [vmem:[#allocation12 + $0x238] sm:$0xff] }
 0x158   :  { %965 = vmatpush1.bf16.msra.mxu1 %v964_v0  ;;  %v1000_v0 = vpack.c.bf16 %v482_v60, %v480_v59  ;;  %v1014_v59 = vpack.c.bf16 %v499_v57, %v497_v56  ;;  %v496_v60 = vld [vmem:[#allocation12 + $0x220] sm:$0xff]  ;;  %v534_v56 = vld [vmem:[#allocation12 + $0x350] sm:$0xff]  ;;  %v537_v57 = vld [vmem:[#allocation12 + $0x368] sm:$0xff] }
 0x159   :  { %967 = vmatprep.subr.bf16.mxu1 %v966_v1 }
 0x15c   :  { %969 = vmatpush1.bf16.msra.mxu1 %v968_v7  ;;  %v486_v7 = vld [vmem:[#allocation12 + $0x1d0] sm:$0xff] }
 0x15d   :  { %971 = vmatprep.subr.bf16.mxu1 %v970_v8  ;;  %v489_v8 = vld [vmem:[#allocation12 + $0x1e8] sm:$0xff]  ;;  %v1004_v11 = vpack.c.bf16 %v486_v7, %v484_v4  ;;  %v500_v4 = vld [vmem:[#allocation12 + $0x240] sm:$0xff] }
 0x15e   :  { %v1006_v12 = vpack.c.bf16 %v491_v9, %v489_v8  ;;  %v505_v7 = vld [vmem:[#allocation12 + $0x268] sm:$0xff]  ;;  %v507_v8 = vld [vmem:[#allocation12 + $0x278] sm:$0xff] }
 0x160   :  { %973 = vmatpush1.bf16.msra.mxu1 %v972_v13  ;;  %v488_v13 = vld [vmem:[#allocation12 + $0x1e0] sm:$0xff] }
 0x161   :  { %975 = vmatprep.subr.bf16.mxu1 %v974_v14  ;;  %v490_v14 = vld [vmem:[#allocation12 + $0x1f0] sm:$0xff] }
 0x162   :  { %v1008_v15 = vpack.c.bf16 %v490_v14, %v488_v13  ;;  %v509_v13 = vld [vmem:[#allocation12 + $0x288] sm:$0xff]  ;;  %v511_v14 = vld [vmem:[#allocation12 + $0x298] sm:$0xff] }
 0x163   :  { %v1026_v16 = vpack.c.bf16 %v511_v14, %v509_v13  ;;  %v547_v13 = vld [vmem:[#allocation12 + $0x3b8] sm:$0xff] }
 0x164   :  { %977 = vmatpush1.bf16.msra.mxu1 %v976_v21  ;;  %v308_v21 = vrot.slane %v307_v20, 2 }
 0x165   :  { %979 = vmatprep.subr.bf16.mxu1 %v978_v22 }
 0x166   :  { %v309_v23 = vadd.f32 %v308_v21, %v307_v20  ;;  %v510_v20 = vld [vmem:[#allocation12 + $0x290] sm:$0xff]  ;;  %v513_v21 = vld [vmem:[#allocation12 + $0x2a8] sm:$0xff] }
 0x168   :  { %981 = vmatpush1.bf16.msra.mxu1 %v980_v28  ;;  %v310_v25 = vrot.slane %v309_v23, 1 }
 0x169   :  { %983 = vmatprep.subr.bf16.mxu1 %v982_v29  ;;  %v265_v29 = vstv %s264_s15 }
 0x16a   :  { %v311_v27 = vadd.f32 %v310_v25, %v309_v23  ;;  %v1028_v23 = vpack.c.bf16 %v510_v20, %v508_v19  ;;  %v546_v19 = vld [vmem:[#allocation12 + $0x3b0] sm:$0xff] }
 0x16c   :  { %985 = vmatpush1.bf16.msra.mxu1 %v984_v35 }
 0x16d   :  { %987 = vmatprep.subr.bf16.mxu1 %v986_v36 }
 0x170   :  { %989 = vmatpush1.bf16.msra.mxu1 %v988_v41 }
 0x171   :  { %991 = vmatprep.subr.bf16.mxu1 %v990_v42 }
 0x174   :  { %993 = vmatpush1.bf16.msra.mxu1 %v992_v45 }
 0x175   :  { %995 = vmatprep.subr.bf16.mxu1 %v994_v50 }
 0x178   :  { %997 = vmatpush1.bf16.msra.mxu1 %v996_v54  ;;  %v1010_v54 = vpack.c.bf16 %v495_v52, %v493_v51  ;;  %v533_v51 = vld [vmem:[#allocation12 + $0x348] sm:$0xff]  ;;  %v535_v52 = vld [vmem:[#allocation12 + $0x358] sm:$0xff] }
 0x179   :  { %999 = vmatprep.subr.bf16.mxu1 %v998_v58 }
 0x17a   :  { %1011 = vmatprep.subr.bf16.mxu0 %v1010_v54  ;;  %v1050_v54 = vpack.c.bf16 %v535_v52, %v533_v51 }
 0x17c   :  { %1001 = vmatpush1.bf16.msra.mxu1 %v1000_v0  ;;  %v501_v0 = vld [vmem:[#allocation12 + $0x248] sm:$0xff] }
 0x17d   :  { %1003 = vmatprep.subr.bf16.mxu1 %v1002_v6  ;;  %v502_v6 = vld [vmem:[#allocation12 + $0x250] sm:$0xff] }
 0x17e   :  { %v1020_v9 = vpack.c.bf16 %v502_v6, %v500_v4  ;;  %v543_v4 = vld [vmem:[#allocation12 + $0x398] sm:$0xff] }
 0x180   :  { %1005 = vmatpush1.bf16.msra.mxu1 %v1004_v11  ;;  %v504_v11 = vld [vmem:[#allocation12 + $0x260] sm:$0xff] }
 0x181   :  { %1007 = vmatprep.subr.bf16.mxu1 %v1006_v12  ;;  %v506_v12 = vld [vmem:[#allocation12 + $0x270] sm:$0xff] }
 0x184   :  { %1009 = vmatpush1.bf16.msra.mxu1 %v1008_v15  ;;  %v1024_v15 = vpack.c.bf16 %v506_v12, %v504_v11  ;;  %v545_v12 = vld [vmem:[#allocation12 + $0x3a8] sm:$0xff] }
 0x1e1   :  { %v246_v46 = vpop.xlane.xlu0 %245 }
 0x1e2   :  { %v247_v47 = vrot.slane %v246_v46, 4 }
 0x1e4   :  { %v248_v53 = vadd.f32 %v247_v47, %v246_v46 }
 0x1e6   :  { %v249_v55 = vrot.slane %v248_v53, 2 }
 0x1e8   :  { %v250_v61 = vadd.f32 %v249_v55, %v248_v53  ;;  %v492_v53 = vld [vmem:[#allocation12 + $0x200] sm:$0xff]  ;;  %v494_v55 = vld [vmem:[#allocation12 + $0x210] sm:$0xff] }
 0x1e9   :  { %v1012_v58 = vpack.c.bf16 %v494_v55, %v492_v53  ;;  %v532_v55 = vld [vmem:[#allocation12 + $0x340] sm:$0xff] }
 0x1ea   :  { %v251_v1 = vrot.slane %v250_v61, 1 }
 0x1eb   :  { %1013 = vmatpush1.bf16.msra.mxu0 %v1012_v58  ;;  %v539_v58 = vld [vmem:[#allocation12 + $0x378] sm:$0xff] }
 0x1ec   :  { %v252_v10 = vadd.f32 %v251_v1, %v250_v61  ;;  %v498_v61 = vld [vmem:[#allocation12 + $0x230] sm:$0xff]  ;;  %v503_v1 = vld [vmem:[#allocation12 + $0x258] sm:$0xff]  ;;  %1015 = vmatprep.subr.bf16.mxu0 %v1014_v59  ;;  %v1052_v59 = vpack.c.bf16 %v534_v56, %v532_v55 }
 0x1ed   :  { %v1016_v2 = vpack.c.bf16 %v498_v61, %v496_v60  ;;  %v1018_v3 = vpack.c.bf16 %v503_v1, %v501_v0  ;;  %v1054_v60 = vpack.c.bf16 %v539_v58, %v537_v57  ;;  %v536_v61 = vld [vmem:[#allocation12 + $0x360] sm:$0xff]  ;;  %v538_v0 = vld [vmem:[#allocation12 + $0x370] sm:$0xff] }
 0x1ee   :  { %1080 = vpush %v252_v10  ;;  %v1022_v10 = vpack.c.bf16 %v507_v8, %v505_v7  ;;  %v1056_v1 = vpack.c.bf16 %v538_v0, %v536_v61  ;;  %v540_v8 = vld [vmem:[#allocation12 + $0x380] sm:$0xff] }
 0x1ef   :  { %1017 = vmatpush1.bf16.msra.mxu0 %v1016_v2 }
 0x1f0   :  { %1019 = vmatprep.subr.bf16.mxu0 %v1018_v3  ;;  %v541_v3 = vld [vmem:[#allocation12 + $0x388] sm:$0xff] }
 0x1f1   :  { %v1058_v7 = vpack.c.bf16 %v543_v4, %v541_v3 }
 0x1f3   :  { %1021 = vmatpush1.bf16.msra.mxu0 %v1020_v9  ;;  %v542_v9 = vld [vmem:[#allocation12 + $0x390] sm:$0xff] }
 0x1f4   :  { %1023 = vmatprep.subr.bf16.mxu0 %v1022_v10  ;;  %v1060_v10 = vpack.c.bf16 %v542_v9, %v540_v8 }
 0x1f7   :  { %1025 = vmatpush1.bf16.msra.mxu0 %v1024_v15  ;;  %v1062_v15 = vpack.c.bf16 %v547_v13, %v545_v12 }
 0x1f8   :  { %1027 = vmatprep.subr.bf16.mxu0 %v1026_v16  ;;  %v544_v16 = vld [vmem:[#allocation12 + $0x3a0] sm:$0xff] }
 0x1f9   :  { %v1064_v20 = vpack.c.bf16 %v546_v19, %v544_v16  ;;  %v1269_v19 = vmov 2147483647  }
 0x1fb   :  { %1029 = vmatpush1.bf16.msra.mxu0 %v1028_v23  ;;  %v551_v23 = vld [vmem:[#allocation12 + $0x3d8] sm:$0xff] }
 0x21f   :  { %s1081_s11 = spop %1080 }
 0x220   :  { %s254_s12 = smul.f32 0.001953125, %s1081_s11 }
 0x222   :  { %s255_s13 = sadd.f32 1e-05, %s254_s12 }
 0x224   :  { %v256_v22 = vstv %s255_s13 }
 0x225   :  { %1104 = vrsqrt.f32 %v256_v22  ;;  %v515_v22 = vld [vmem:[#allocation12 + $0x2b8] sm:$0xff] }
 0x226   :  { %v1030_v25 = vpack.c.bf16 %v515_v22, %v513_v21  ;;  %v549_v22 = vld [vmem:[#allocation12 + $0x3c8] sm:$0xff] }
 0x228   :  { %1031 = vmatprep.subr.bf16.mxu0 %v1030_v25  ;;  %v548_v25 = vld [vmem:[#allocation12 + $0x3c0] sm:$0xff] }
 0x22f   :  { %v1105_v26 = vpop.eup %1104 }
 0x230   :  { %1082 = vpush %v1105_v26  ;;  %v512_v26 = vld [vmem:[#allocation12 + $0x2a0] sm:$0xff] }
 0x231   :  { %1084 = vpush %v311_v27  ;;  %v514_v27 = vld [vmem:[#allocation12 + $0x2b0] sm:$0xff] }
 0x261   :  { %s1083_s2 = spop %1082 }
 0x262   :  { %s260_s16 = smul.f32 %s1083_s2, %s259_s14  ;;  %s1085_s17 = spop %1084 }
 0x263   :  { %s313_s18 = smul.f32 0.001953125, %s1085_s17 }
 0x264   :  { %v261_v28 = vstv %s260_s16 }
 0x265   :  { %v262_v30 = vmul.f32 %v261_v28, %v1375_v17  ;;  %v263_v31 = vmul.f32 %v261_v28, %v1377_v18  ;;  %v314_v32 = vstv %s313_s18  ;;  %v517_v28 = vld [vmem:[#allocation12 + $0x2c8] sm:$0xff] }
 0x266   :  { %v1391_v33 = vsub.f32 %v1364_v62, %v314_v32  ;;  %v1394_v35 = vsub.f32 %v1366_v63, %v314_v32  ;;  %v516_v32 = vld [vmem:[#allocation12 + $0x2c0] sm:$0xff] }
 0x267   :  { %v266_v36 = vadd.f32 %v265_v29, %v262_v30  ;;  %v267_v37 = vadd.f32 %v265_v29, %v263_v31  ;;  %v519_v29 = vld [vmem:[#allocation12 + $0x2d8] sm:$0xff]  ;;  %v1032_v30 = vpack.c.bf16 %v514_v27, %v512_v26  ;;  %v1066_v27 = vpack.c.bf16 %v551_v23, %v549_v22 }
 0x268   :  { %v317_v38 = vmul.f32 %v1391_v33, %v1391_v33  ;;  %v318_v39 = vmul.f32 %v1394_v35, %v1394_v35  ;;  %v1034_v31 = vpack.c.bf16 %v519_v29, %v517_v28  ;;  %v550_v28 = vld [vmem:[#allocation12 + $0x3d0] sm:$0xff]  ;;  %v553_v29 = vld [vmem:[#allocation12 + $0x3e8] sm:$0xff] }
 0x269   :  { %v268_v40 = vmax.f32 %v266_v36, 0.0  ;;  %v269_v41 = vmax.f32 %v267_v37, 0.0  ;;  %v518_v36 = vld [vmem:[#allocation12 + $0x2d0] sm:$0xff]  ;;  %v521_v37 = vld [vmem:[#allocation12 + $0x2e8] sm:$0xff]  ;;  %1033 = vmatpush1.bf16.msra.mxu0 %v1032_v30  ;;  %v555_v30 = vld [vmem:[#allocation12 + $0x3f8] sm:$0xff] }
 0x26a   :  { %v321_v17 = vcombine.low %v317_v38, %v318_v39  ;;  %v523_v38 = vld [vmem:[#allocation12 + $0x2f8] sm:$0xff]  ;;  %v1036_v39 = vpack.c.bf16 %v518_v36, %v516_v32  ;;  %1035 = vmatprep.subr.bf16.mxu0 %v1034_v31  ;;  %v1068_v31 = vpack.c.bf16 %v550_v28, %v548_v25  ;;  %v1070_v32 = vpack.c.bf16 %v555_v30, %v553_v29  ;;  %v552_v36 = vld [vmem:[#allocation12 + $0x3e0] sm:$0xff] }
 0x26b   :  { %v376_v42 = vcombine.low %v268_v40, %v269_v41  ;;  %v1038_v40 = vpack.c.bf16 %v523_v38, %v521_v37  ;;  %v520_v41 = vld [vmem:[#allocation12 + $0x2e0] sm:$0xff]  ;;  %v554_v37 = vld [vmem:[#allocation12 + $0x3f0] sm:$0xff] }
 0x26c   :  { %v328_v18 = vrot.slane %v321_v17, %v1357_v34  ;;  %v522_v17 = vld [vmem:[#allocation12 + $0x2f0] sm:$0xff] }
 0x26d   :  { %v383_v62 = vrot.slane %v376_v42, %v1357_v34  ;;  %v525_v42 = vld [vmem:[#allocation12 + $0x308] sm:$0xff]  ;;  %1037 = vmatpush1.bf16.msra.mxu0 %v1036_v39  ;;  %v1072_v39 = vpack.c.bf16 %v554_v37, %v552_v36 }
 0x26e   :  { %v329_v43 = vcombine.high %v328_v18, %v328_v18  ;;  %v336_v63 = vrot.slane %v328_v18, %v1357_v34  ;;  %v527_v18 = vld [vmem:[#allocation12 + $0x318] sm:$0xff]  ;;  %1039 = vmatprep.subr.bf16.mxu0 %v1038_v40 }
 0x26f   :  { %v384_v44 = vcombine.high %v383_v62, %v383_v62  ;;  %v391_v49 = vrot.slane %v383_v62, %v1357_v34  ;;  %v1040_v62 = vpack.c.bf16 %v522_v17, %v520_v41 }
 0x270   :  { %v343_v45 = vrot.slane %v329_v43, %v1357_v34  ;;  %v346_v47 = vsel %vm196_vm0, %v336_v63, 0.0  ;;  %v1042_v43 = vpack.c.bf16 %v527_v18, %v525_v42  ;;  %v524_v63 = vld [vmem:[#allocation12 + $0x300] sm:$0xff] }
 0x271   :  { %v398_v46 = vrot.slane %v384_v44, %v1357_v34  ;;  %v526_v44 = vld [vmem:[#allocation12 + $0x310] sm:$0xff]  ;;  %1041 = vmatpush1.bf16.msra.mxu0 %v1040_v62  ;;  %v369_v62 = vstv %s935_s22 }
 0x272   :  { %v347_v48 = vsel %vm196_vm0, %v343_v45, 0.0  ;;  %v529_v45 = vld [vmem:[#allocation12 + $0x328] sm:$0xff]  ;;  %1043 = vmatprep.subr.bf16.mxu0 %v1042_v43 }
 0x273   :  { %632 = vmatprep.mubr.f32.mxu1 %v398_v46  ;;  %v348_v50 = vadd.f32 %v347_v48, %v346_v47  ;;  %v531_v46 = vld [vmem:[#allocation12 + $0x338] sm:$0xff]  ;;  %v1044_v47 = vpack.c.bf16 %v526_v44, %v524_v63 }
 0x274   :  { %633 = vmatmul.mubr.f32.vlgmr.msra.gmra.mrb[0].mxu1 %v391_v49  ;;  %v1046_v48 = vpack.c.bf16 %v531_v46, %v529_v45  ;;  %v528_v49 = vld [vmem:[#allocation12 + $0x320] sm:$0xff] }
 0x275   :  { %349 = vadd.xlane.f32.xlu1 %v348_v50  ;;  %v530_v50 = vld [vmem:[#allocation12 + $0x330] sm:$0xff]  ;;  %1045 = vmatpush1.bf16.msra.mxu0 %v1044_v47 }
 0x276   :  { %v1048_v53 = vpack.c.bf16 %v530_v50, %v528_v49  ;;  %1047 = vmatprep.subr.bf16.mxu0 %v1046_v48 }
 0x279   :  { %1049 = vmatpush1.bf16.msra.mxu0 %v1048_v53  ;;  %v560_v53 = vsub.s32 0, %v1354_v24 }
 0x27a   :  { %1051 = vmatprep.subr.bf16.mxu0 %v1050_v54  ;;  %v1419_v54 = vand.u32 127, %v175_v5 }
 0x27c   :  { %vm735_vm1 = vcmp.ge.s32.totalorder %v1419_v54, 13  ;;  %vm737_vm2 = vcmp.lt.s32.totalorder %v1419_v54, 27  ;;  %vm747_vm3 = vcmp.ge.s32.totalorder %v1419_v54, 27  ;;  %vm749_vm4 = vcmp.lt.s32.totalorder %v1419_v54, 42 }
 0x27d   :  { %1053 = vmatpush1.bf16.msra.mxu0 %v1052_v59  ;;  %vm1426_vm5 = vmand %vm735_vm1, %vm737_vm2  ;;  %vm727_vm6 = vcmp.lt.s32.totalorder %v1419_v54, 13 }
 0x27e   :  { %1055 = vmatprep.subr.bf16.mxu0 %v1054_v60  ;;  %vm1431_vm8 = vmand %vm747_vm3, %vm749_vm4  ;;  %v733_v13 = vsel %vm727_vm6, %v1419_v54, 1073741824 }
 0x281   :  { %1057 = vmatpush1.bf16.msra.mxu0 %v1056_v1 }
 0x282   :  { %1059 = vmatprep.subr.bf16.mxu0 %v1058_v7 }
 0x285   :  { %1061 = vmatpush1.bf16.msra.mxu0 %v1060_v10 }
 0x286   :  { %1063 = vmatprep.subr.bf16.mxu0 %v1062_v15 }
 0x289   :  { %1065 = vmatpush1.bf16.msra.mxu0 %v1064_v20  ;;  %v807_v20 = vsel %vm196_vm0, 1073741824, %v1269_v19 }
 0x28a   :  { %1067 = vmatprep.subr.bf16.mxu0 %v1066_v27 }
 0x28d   :  { %1069 = vmatpush1.bf16.msra.mxu0 %v1068_v31 }
 0x28e   :  { %1071 = vmatprep.subr.bf16.mxu0 %v1070_v32 }
 0x291   :  { %1073 = vmatpush1.bf16.msra.mxu0 %v1072_v39 }
 0x302   :  { %v350_v2 = vpop.xlane.xlu1 %349 }
 0x303   :  { %v351_v6 = vrot.slane %v350_v2, 4 }
 0x305   :  { %v352_v11 = vadd.f32 %v351_v6, %v350_v2 }
 0x307   :  { %v353_v14 = vrot.slane %v352_v11, 2 }
 0x309   :  { %v354_v21 = vadd.f32 %v353_v14, %v352_v11  ;;  %v937_v11 = vadd.s32 4294967283, %v1419_v54  ;;  %v939_v14 = vadd.s32 4294967269, %v1419_v54 }
 0x30b   :  { %v355_v26 = vrot.slane %v354_v21, 1  ;;  %v745_v12 = vsel %vm1426_vm5, %v937_v11, 1073741824  ;;  %v757_v27 = vsel %vm1431_vm8, %v939_v14, 1073741824 }
 0x30d   :  { %v356_v38 = vadd.f32 %v355_v26, %v354_v21 }
 0x30f   :  { %1086 = vpush %v356_v38 }
 0x340   :  { %s1087_s4 = spop %1086 }
 0x341   :  { %s358_s19 = smul.f32 0.001953125, %s1087_s4 }
 0x343   :  { %s359_s20 = sadd.f32 1e-05, %s358_s19 }
 0x345   :  { %v360_v40 = vstv %s359_s20 }
 0x346   :  { %1106 = vrsqrt.f32 %v360_v40 }
 0x347   :  { %v634_v41 = vpop.f32.mrb[0].mxu1 }
 0x348   :  { %v636_v17 = vpop.f32.mrb[1].mxu1 }
 0x350   :  { %v1107_v42 = vpop.eup %1106 }
 0x351   :  { %1088 = vpush %v1107_v42 }
 0x382   :  { %s1089_s23 = spop %1088 }
 0x383   :  { %s364_s24 = smul.f32 %s1089_s23, %s934_s21 }
 0x385   :  { %v365_v18 = vstv %s364_s24 }
 0x386   :  { %v366_v43 = vmul.f32 %v365_v18, %v1391_v33  ;;  %v367_v63 = vmul.f32 %v365_v18, %v1394_v35  ;;  %v556_v33 = vld [vmem:[%s1496_s6] sm:$0x3]  ;;  %v564_v35 = vsub.s32 1, %v1354_v24  ;;  %s1270_s6 = smov [#allocation14]  }
 0x387   :  { %v561_v55 = vrot.slane %v556_v33, %v560_v53  ;;  %s899_s27 = sshll.u32 %s1270_s6, 4  ;;  %s900_s27 = int_to_ptr.vmem [resolvable:$true] %s899_s27 }
 0x388   :  { %v370_v44 = vadd.f32 %v369_v62, %v366_v43  ;;  %v371_v45 = vadd.f32 %v369_v62, %v367_v63  ;;  %v565_v56 = vrot.slane %v556_v33, %v564_v35  ;;  %s1200_s28 = scalar_lea.vmem %s900_s27, 64  ;;  %p1205_p9 = scmp.lt.s32.totalorder %s900_s27, %s900_s27 }
 0x389   :  { %v635_v57 = vadd.f32 %v634_v41, %v561_v55  ;;  %p1201_p8 = scmp.ne.s32.totalorder %s900_s27, %s1200_s28  ;;  %p1206_p10 = scmp.lt.s32.totalorder %s1200_s28, %s1200_s28 }
 0x38a   :  { %v372_v46 = vmax.f32 %v370_v44, 0.0  ;;  %v373_v47 = vmax.f32 %v371_v45, 0.0  ;;  %v637_v58 = vadd.f32 %v636_v17, %v565_v56 }
 0x38b   :  { %p1207_p11 = por %p1206_p10, %p1205_p9 }
 0x38c   :  { %v403_v48 = vcombine.low %v372_v46, %v373_v47 }
 0x38d   :  { %p1208_p12 = pnand %p1207_p11, %p1201_p8 }
 0x38e   :  { %v410_v49 = vrot.slane %v403_v48, %v1357_v34 }
 0x390   :  { %v411_v50 = vcombine.high %v410_v49, %v410_v49  ;;  %v418_v52 = vrot.slane %v410_v49, %v1357_v34 }
 0x392   :  { %v425_v51 = vrot.slane %v411_v50, %v1357_v34  ;;  %v724_v34 = vadd.s32 128, %v1419_v54 }
 0x394   :  { %703 = vmatprep.mubr.f32.mxu0 %v425_v51  ;;  %vm762_vm7 = vcmp.lt.s32.totalorder %v724_v34, 143 }
 0x395   :  { %704 = vmatmul.mubr.f32.vlgmr.msra.gmra.mrb[0].mxu0 %v418_v52  ;;  %v769_v26 = vsel %vm762_vm7, %v1419_v54, 1073741824 }
 0x468   :  { %v705_v59 = vpop.f32.mrb[0].mxu0 }
 0x469   :  { %v706_v5 = vadd.f32 %v705_v59, %v635_v57  ;;  %v707_v60 = vpop.f32.mrb[1].mxu0 }
 0x46a   :  { %v708_v61 = vadd.f32 %v707_v60, %v637_v58 }
 0x46b   :  { %v741_v1 = vsel %vm1426_vm5, %v706_v5, -inf  ;;  %v731_v2 = vsel %vm727_vm6, %v706_v5, -inf  ;;  %v753_v7 = vsel %vm1431_vm8, %v706_v5, -inf }
 0x46c   :  { %v775_v3 = vsel %vm196_vm0, %v741_v1, -inf  ;;  %v770_v4 = vsel %vm196_vm0, %v731_v2, -inf  ;;  %v766_v6 = vsel %vm762_vm7, %v708_v61, -inf  ;;  %v712_v8 = vcombine.low %v706_v5, %v708_v61 }
 0x46d   :  { %778 = vmax.xlane.f32.xlu1 %v775_v3  ;;  %773 = vmax.xlane.f32.xlu0 %v770_v4  ;;  %v786_v9 = vsel %vm196_vm0, %v766_v6, -inf  ;;  %v780_v10 = vsel %vm196_vm0, %v753_v7, -inf }
 0x46e   :  { %936 = vst.sshfl [vmem:[#allocation14] sm:$0x33 pattern:$0x76325410] %v712_v8 }
 0x471   :  { %788 = vmax.xlane.f32.xlu1 %v786_v9  ;;  %783 = vmax.xlane.f32.xlu0 %v780_v10 }
 0x4fa   :  { %v779_v15 = vpop.xlane.xlu1 %778  ;;  %v774_v16 = vpop.xlane.xlu0 %773 }
 0x4fb   :  { %vm792_vm9 = vcmp.eq.f32.partialorder %v741_v1, %v779_v15  ;;  %vm790_vm10 = vcmp.eq.f32.partialorder %v731_v2, %v774_v16 }
 0x4fc   :  { %v800_v21 = vsel %vm792_vm9, %v745_v12, 1073741824  ;;  %v798_v22 = vsel %vm790_vm10, %v733_v13, 1073741824 }
 0x4fd   :  { %v824_v23 = vsel %vm196_vm0, %v800_v21, 2147483647  ;;  %v806_v25 = vsel %vm196_vm0, %v798_v22, 2147483647 }
 0x4fe   :  { %vm826_vm11 = vcmp.lt.s32.totalorder %v824_v23, %v807_v20  ;;  %vm808_vm12 = vcmp.lt.s32.totalorder %v806_v25, %v807_v20  ;;  %v789_v28 = vpop.xlane.xlu1 %788  ;;  %v784_v29 = vpop.xlane.xlu0 %783 }
 0x4ff   :  { %vm797_vm13 = vcmp.eq.f32.partialorder %v766_v6, %v789_v28  ;;  %vm794_vm14 = vcmp.eq.f32.partialorder %v753_v7, %v784_v29  ;;  %v827_v30 = vsel %vm826_vm11, %v824_v23, %v807_v20  ;;  %v809_v31 = vsel %vm808_vm12, %v806_v25, %v807_v20 }
 0x500   :  { %v805_v32 = vsel %vm797_vm13, %v769_v26, 1073741824  ;;  %v802_v36 = vsel %vm794_vm14, %v757_v27, 1073741824  ;;  %v829_v37 = vshra.s32 %v827_v30, 16  ;;  %v811_v38 = vshra.s32 %v809_v31, 16 }
 0x501   :  { %v861_v39 = vsel %vm196_vm0, %v805_v32, 2147483647  ;;  %v842_v40 = vsel %vm196_vm0, %v802_v36, 2147483647  ;;  %v828_v45 = vand.u32 65535, %v827_v30  ;;  %v810_v46 = vand.u32 65535, %v809_v31 }
 0x502   :  { %vm862_vm15 = vcmp.lt.s32.totalorder %v807_v20, %v861_v39  ;;  %vm844_vm1 = vcmp.lt.s32.totalorder %v842_v40, %v807_v20  ;;  %v831_v41 = vcvt.s32.f32 %v829_v37  ;;  %v813_v17 = vcvt.s32.f32 %v811_v38 }
 0x503   :  { %v863_v42 = vsel %vm862_vm15, %v807_v20, %v861_v39  ;;  %v845_v18 = vsel %vm844_vm1, %v842_v40, %v807_v20  ;;  %v830_v49 = vcvt.s32.f32 %v828_v45  ;;  %v812_v50 = vcvt.s32.f32 %v810_v46 }
 0x504   :  { %832 = vmin.xlane.f32.xlu1 %v831_v41  ;;  %814 = vmin.xlane.f32.xlu0 %v813_v17  ;;  %v865_v62 = vshra.s32 %v863_v42, 16  ;;  %v847_v43 = vshra.s32 %v845_v18, 16  ;;  %v864_v51 = vand.u32 65535, %v863_v42  ;;  %v846_v52 = vand.u32 65535, %v845_v18 }
 0x506   :  { %v867_v63 = vcvt.s32.f32 %v865_v62  ;;  %v849_v44 = vcvt.s32.f32 %v847_v43  ;;  %v866_v56 = vcvt.s32.f32 %v864_v51  ;;  %v848_v34 = vcvt.s32.f32 %v846_v52 }
 0x508   :  { %868 = vmin.xlane.f32.xlu1 %v867_v63  ;;  %850 = vmin.xlane.f32.xlu0 %v849_v44 }
 0x591   :  { %v833_v47 = vpop.xlane.xlu1 %832  ;;  %v815_v48 = vpop.xlane.xlu0 %814 }
 0x592   :  { %vm834_vm0 = vcmp.eq.f32.partialorder %v831_v41, %v833_v47  ;;  %vm816_vm2 = vcmp.eq.f32.partialorder %v813_v17, %v815_v48 }
 0x593   :  { %v835_v53 = vsel %vm834_vm0, %v830_v49, inf  ;;  %v817_v33 = vsel %vm816_vm2, %v812_v50, inf }
 0x594   :  { %836 = vmin.xlane.f32.xlu1 %v835_v53  ;;  %818 = vmin.xlane.f32.xlu0 %v817_v33 }
 0x595   :  { %v869_v35 = vpop.xlane.xlu1 %868  ;;  %v851_v55 = vpop.xlane.xlu0 %850 }
 0x596   :  { %vm870_vm3 = vcmp.eq.f32.partialorder %v867_v63, %v869_v35  ;;  %vm852_vm4 = vcmp.eq.f32.partialorder %v849_v44, %v851_v55 }
 0x597   :  { %v871_v57 = vsel %vm870_vm3, %v866_v56, inf  ;;  %v853_v58 = vsel %vm852_vm4, %v848_v34, inf }
 0x598   :  { %872 = vmin.xlane.f32.xlu1 %v871_v57  ;;  %854 = vmin.xlane.f32.xlu0 %v853_v58 }
 0x599   :  { %1211 = shalt.err (!%p1208_p12)
}
 0x59a   :  { %s1212_s30 = scalar_lea.hbm %s1497_s7, 64 }
 0x59b   :  { %p1213_p13 = scmp.ne.s32.totalorder %s1497_s7, %s1212_s30  ;;  %p1216_p0 = scmp.lt.u32.totalorder %s1212_s30, %s1497_s7 }
 0x59d   :  { %p1218_p1 = pnand %p1216_p0, %p1213_p13 }
 0x59f   :  { %1221 = shalt.err (!%p1218_p1)
}
 0x5a0   :  { %902 = dma.vmem_to_hbm [thread:$0]  %s900_s27, 64, %s1497_s7, [#allocation4]   ;;  %v821_v59 = vcvt.f32.s32 %v815_v48  ;;  %v839_v24 = vcvt.f32.s32 %v833_v47  ;;  %v875_v2 = vcvt.f32.s32 %v869_v35  ;;  %v857_v4 = vcvt.f32.s32 %v851_v55 }
 0x5a1   :  { %vm887_vm6 = vcmp.eq.s32.totalorder %v1419_v54, 3  ;;  %vm886_vm7 = vcmp.eq.s32.totalorder %v1419_v54, 2  ;;  %vm885_vm9 = vcmp.eq.s32.totalorder %v1419_v54, 1  ;;  %s1271_s7 = smov [#allocation15]   ;;  %vm884_vm10 = vcmp.eq.s32.totalorder %v1419_v54, 0 }
 0x5a2   :  { %v822_v61 = vshll.u32 %v821_v59, 16  ;;  %v840_v3 = vshll.u32 %v839_v24, 16  ;;  %v876_v13 = vshll.u32 %v875_v2, 16  ;;  %v858_v14 = vshll.u32 %v857_v4, 16  ;;  %s909_s12 = sshll.u32 %s1271_s7, 4  ;;  %s910_s12 = int_to_ptr.vmem [resolvable:$true] %s909_s12 }
 0x5a3   :  { %s1222_s13 = scalar_lea.vmem %s910_s12, 32  ;;  %p1227_p3 = scmp.lt.s32.totalorder %s910_s12, %s910_s12 }
 0x5a4   :  { %p1223_p2 = scmp.ne.s32.totalorder %s910_s12, %s1222_s13  ;;  %p1228_p4 = scmp.lt.s32.totalorder %s1222_s13, %s1222_s13 }
 0x5a6   :  { %p1229_p5 = por %p1228_p4, %p1227_p3 }
 0x5a8   :  { %p1230_p6 = pnand %p1229_p5, %p1223_p2 }
 0x621   :  { %v837_v5 = vpop.xlane.xlu1 %836  ;;  %v819_v60 = vpop.xlane.xlu0 %818 }
 0x622   :  { %v838_v0 = vcvt.f32.s32 %v837_v5  ;;  %v820_v1 = vcvt.f32.s32 %v819_v60 }
 0x624   :  { %v823_v6 = vadd.s32 %v822_v61, %v820_v1  ;;  %v841_v9 = vadd.s32 %v840_v3, %v838_v0 }
 0x625   :  { %v873_v7 = vpop.xlane.xlu1 %872  ;;  %v855_v8 = vpop.xlane.xlu0 %854 }
 0x626   :  { %v878_v10 = vadd.s32 1, %v823_v6  ;;  %v874_v11 = vcvt.f32.s32 %v873_v7  ;;  %v856_v12 = vcvt.f32.s32 %v855_v8 }
 0x628   :  { %vm879_vm5 = vcmp.gt.s32.totalorder %v841_v9, %v878_v10  ;;  %v877_v15 = vadd.s32 %v876_v13, %v874_v11  ;;  %v859_v20 = vadd.s32 %v858_v14, %v856_v12 }
 0x629   :  { %v880_v16 = vsel %vm879_vm5, %v841_v9, %v878_v10 }
 0x62a   :  { %v881_v19 = vadd.s32 1, %v880_v16  ;;  %v888_v21 = vsel %vm887_vm6, %v877_v15, 0 }
 0x62c   :  { %vm882_vm8 = vcmp.gt.s32.totalorder %v859_v20, %v881_v19 }
 0x62d   :  { %v883_v22 = vsel %vm882_vm8, %v859_v20, %v881_v19 }
 0x62e   :  { %v889_v23 = vsel %vm886_vm7, %v883_v22, %v888_v21 }
 0x62f   :  { %v890_v25 = vsel %vm885_vm9, %v880_v16, %v889_v23 }
 0x630   :  { %v891_v26 = vsel %vm884_vm10, %v823_v6, %v890_v25 }
 0x631   :  { %892 = vst [vmem:[#allocation15] sm:$0x3] %v891_v26 }
 0x632   :  { %1233 = shalt.err (!%p1230_p6)
}
 0x633   :  { %s1234_s2 = scalar_lea.hbm %s1498_s8, 32 }
 0x634   :  { %p1235_p7 = scmp.ne.s32.totalorder %s1498_s8, %s1234_s2  ;;  %p1238_p8 = scmp.lt.u32.totalorder %s1234_s2, %s1498_s8 }
 0x636   :  { %p1240_p9 = pnand %p1238_p8, %p1235_p7 }
 0x638   :  { %1243 = shalt.err (!%p1240_p9)
}
 0x639   :  { %912 = dma.vmem_to_hbm [thread:$0]  %s910_s12, 32, %s1498_s8, [#allocation16]  }
 0x63a   :  { %1254 = dma.done.wait [#allocation4], 64  }
 0x63b   :  { %1255 = vsyncadd [#allocation4], 4294967232 }
 0x63c   :  { %1256 = dma.done.wait [#allocation16], 32  }
 0x63d   :  { %1257 = vsyncadd [#allocation16], 4294967264 }
 0x63e   :  { %919 = vsyncpa [#allocation3], 1 }
 0x63f   :  { %920 = vsyncpa [#allocation13], 1 }
 0x640   :  { %921 = vsyncpa [#allocation4], 1 }
 0x641   :  { %922 = vsyncpa [#allocation16], 1 }
 0x642   :  { %923 = vsyncpa [#allocation5], 1 }
 0x643   :  { %924 = vsyncpa [#allocation8], 1 }
 0x644   :  { %925 = vsyncpa [#allocation11], 1 }

</bundles_post_ra>
